<compile_context>
chip_gen: v7x
topology: tpu7x:2x2x1
jax: 0.10.0
libtpu: 0.0.40
codegen_flags: <defaults>
</compile_context>

<pallas_src>
import functools

import jax
import jax.numpy as jnp
from jax import lax
from jax.experimental import pallas as pl
from jax.experimental.pallas import tpu as pltpu

EPS = 1e-5  # matches torch.nn.GroupNorm default


# --------------------------------------------------------------------------
# in-kernel helpers (channels-first tiles: (C, H*W))
# --------------------------------------------------------------------------
def _groupnorm_silu(v, gmask, gamma, beta, inv_n):
    """GroupNorm (two-pass, biased variance) + SiLU on a (C, HW) tile.

    gmask[i, j] = 1.0 iff channels i and j are in the same group, so
    sum_lanes(gmask @ v) gives the per-group sums broadcast back to channels.
    """
    mean_c = jnp.sum(jnp.dot(gmask, v, preferred_element_type=jnp.float32),
                     axis=1, keepdims=True) * inv_n                      # (C, 1)
    d = v - mean_c
    var_c = jnp.sum(jnp.dot(gmask, d * d, preferred_element_type=jnp.float32),
                    axis=1, keepdims=True) * inv_n                       # (C, 1)
    h = d * lax.rsqrt(var_c + EPS) * gamma + beta
    return h * jax.nn.sigmoid(h)                                         # SiLU


def _conv3x3_cf(hpad_ref, w_t_ref, mask_ref, H, W):
    """3x3 'SAME' conv on channels-first data staged in a zero-padded flat scratch.

    hpad_ref : (Cin, HW + 2*(W+1)) f32 scratch; the image interior lives at lanes
               [W+1, W+1+HW).  Each tap becomes a contiguous lane window; taps that
               fall outside the image are zeroed with a precomputed validity mask.
    w_t_ref  : (3, 3, Cout, Cin) bf16 pre-transposed weights.
    mask_ref : (9, HW) f32 validity masks (1.0 inside image, 0.0 outside).
    returns  : (Cout, HW) f32 accumulator.
    """
    HW = H * W
    pad = W + 1
    Cout = w_t_ref.shape[2]
    acc = jnp.zeros((Cout, HW), jnp.float32)
    for dy in range(3):
        for dx in range(3):
            oy, ox = dy - 1, dx - 1
            tap = dy * 3 + dx
            start = pad + oy * W + ox
            win = hpad_ref[:, start:start + HW]                          # (Cin, HW) f32
            valid = mask_ref[tap:tap + 1, :] > 0.5                       # (1, HW) bool
            win = jnp.where(valid, win, 0.0).astype(jnp.bfloat16)
            acc = acc + jnp.dot(w_t_ref[dy, dx], win,
                                preferred_element_type=jnp.float32)
    return acc


# --------------------------------------------------------------------------
# the fused ResBlock kernel (one grid step == one batch element)
# --------------------------------------------------------------------------
def res_block_kernel(x_ref, t_ref, mask_ref,
                     g1_ref, b1_ref, gm1_ref,
                     ws_ref, bs_ref, wh_ref, bh_ref,
                     w1t_ref, c1b_ref,
                     g2_ref, b2_ref, gm2_ref,
                     w2t_ref, c2b_ref, swt_ref, sb_ref,
                     o_ref, pad1_ref, pad2_ref,
                     *, H, W, groups):
    HW = H * W

    # Zero both halo scratches every step (cheap, and megacore-safe: no reliance on
    # program_id==0 running on every core).
    pad1_ref[...] = jnp.zeros_like(pad1_ref)
    pad2_ref[...] = jnp.zeros_like(pad2_ref)

    # ---- stage 1: GroupNorm1 + SiLU + conv1(3x3) + FiLM(time) ---------------
    v = x_ref[0]                                                         # (Cin, HW) f32
    cin = v.shape[0]
    h = _groupnorm_silu(v, gm1_ref[...], g1_ref[...], b1_ref[...],
                        1.0 / float(HW * (cin // groups)))
    pad1_ref[:, W + 1:W + 1 + HW] = h

    # time MLP: SiLU -> Linear, with the 2*Cout weight already split on the host
    t = t_ref[0]                                                         # (T, 1)
    t = t * jax.nn.sigmoid(t)
    t_b = jnp.broadcast_to(t, (t.shape[0], HW))                          # (T, HW)
    scale = jnp.dot(ws_ref[...], t_b, preferred_element_type=jnp.float32) + bs_ref[...]
    shift = jnp.dot(wh_ref[...], t_b, preferred_element_type=jnp.float32) + bh_ref[...]

    h1 = _conv3x3_cf(pad1_ref, w1t_ref, mask_ref, H, W) + c1b_ref[...]
    h1 = h1 * (1.0 + scale) + shift                                      # (Cout, HW)

    # ---- stage 2: GroupNorm2 + SiLU + (dropout = id) + conv2 + shortcut -----
    cmid = h1.shape[0]
    h2 = _groupnorm_silu(h1, gm2_ref[...], g2_ref[...], b2_ref[...],
                         1.0 / float(HW * (cmid // groups)))
    # TODO(synk): nn.Dropout is identity in eval/inference mode; training-mode random
    #             mask not implemented.
    pad2_ref[:, W + 1:W + 1 + HW] = h2

    out = _conv3x3_cf(pad2_ref, w2t_ref, mask_ref, H, W) + c2b_ref[...]
    out = out + jnp.dot(swt_ref[...], v.astype(jnp.bfloat16),
                        preferred_element_type=jnp.float32) + sb_ref[...]
    o_ref[0] = out                                                       # (Cout, HW), lane-dense


# --------------------------------------------------------------------------
# host-side helpers (tiny, one-time parameter plumbing)
# --------------------------------------------------------------------------
def _group_mask(C, groups):
    cg = C // groups
    i = jnp.arange(C)
    return (i[:, None] // cg == i[None, :] // cg).astype(jnp.float32)    # (C, C)


def _tap_masks(H, W):
    yy = (jnp.arange(H * W) // W).reshape(1, -1)
    xx = (jnp.arange(H * W) % W).reshape(1, -1)
    rows = []
    for oy in (-1, 0, 1):
        for ox in (-1, 0, 1):
            valid = ((yy + oy >= 0) & (yy + oy < H) &
                     (xx + ox >= 0) & (xx + ox < W))
            rows.append(valid.astype(jnp.float32))
    return jnp.concatenate(rows, axis=0)                                 # (9, HW)


# --------------------------------------------------------------------------
# wrapper (NCHW in / NCHW out, like the PyTorch module)
# --------------------------------------------------------------------------
def res_block_forward(x_nchw, time_emb, params, groups=8):
    B, Cin, H, W = x_nchw.shape
    HW = H * W
    Cout = params["conv1_w"].shape[3]
    T = time_emb.shape[1]
    padw = HW + 2 * (W + 1)

    # boundary plumbing only -- NCHW -> (B, C, H*W) is a free reshape (no transpose)
    x_cf = x_nchw.reshape(B, Cin, HW).astype(jnp.float32)
    t_col = time_emb.astype(jnp.float32).reshape(B, T, 1)

    # tiny host-side parameter massaging: transposed / split / column-shaped weights so
    # the kernel never needs a transpose or a lane slice.
    masks = _tap_masks(H, W)
    gm1 = _group_mask(Cin, groups)
    gm2 = _group_mask(Cout, groups)
    g1 = params["gn1_w"].reshape(Cin, 1).astype(jnp.float32)
    b1 = params["gn1_b"].reshape(Cin, 1).astype(jnp.float32)
    g2 = params["gn2_w"].reshape(Cout, 1).astype(jnp.float32)
    b2 = params["gn2_b"].reshape(Cout, 1).astype(jnp.float32)
    w1t = jnp.transpose(params["conv1_w"], (0, 1, 3, 2)).astype(jnp.bfloat16)  # (3,3,Cout,Cin)
    w2t = jnp.transpose(params["conv2_w"], (0, 1, 3, 2)).astype(jnp.bfloat16)  # (3,3,Cout,Cout)
    c1b = params["conv1_b"].reshape(Cout, 1).astype(jnp.float32)
    c2b = params["conv2_b"].reshape(Cout, 1).astype(jnp.float32)
    ws = params["mlp_w"][:, :Cout].T.astype(jnp.float32)                       # (Cout, T) scale
    wh = params["mlp_w"][:, Cout:].T.astype(jnp.float32)                       # (Cout, T) shift
    bs = params["mlp_b"][:Cout].reshape(Cout, 1).astype(jnp.float32)
    bh = params["mlp_b"][Cout:].reshape(Cout, 1).astype(jnp.float32)
    swt = params["short_w"].T.astype(jnp.bfloat16)                             # (Cout, Cin)
    sb = params["short_b"].reshape(Cout, 1).astype(jnp.float32)

    bcast2 = lambda b: (0, 0)

    out_cf = pl.pallas_call(
        functools.partial(res_block_kernel, H=H, W=W, groups=groups),
        out_shape=jax.ShapeDtypeStruct((B, Cout, HW), jnp.float32),
        grid=(B,),
        in_specs=[
            pl.BlockSpec((1, Cin, HW), lambda b: (b, 0, 0)),     # x (channels-first)
            pl.BlockSpec((1, T, 1), lambda b: (b, 0, 0)),        # time embedding column
            pl.BlockSpec((9, HW), bcast2),                       # conv tap validity masks
            pl.BlockSpec((Cin, 1), bcast2),                      # gn1 gamma
            pl.BlockSpec((Cin, 1), bcast2),                      # gn1 beta
            pl.BlockSpec((Cin, Cin), bcast2),                    # group mask 1
            pl.BlockSpec((Cout, T), bcast2),                     # mlp w (scale half)^T
            pl.BlockSpec((Cout, 1), bcast2),                     # mlp b (scale half)
            pl.BlockSpec((Cout, T), bcast2),                     # mlp w (shift half)^T
            pl.BlockSpec((Cout, 1), bcast2),                     # mlp b (shift half)
            pl.BlockSpec((3, 3, Cout, Cin), lambda b: (0, 0, 0, 0)),   # conv1 w^T (bf16)
            pl.BlockSpec((Cout, 1), bcast2),                     # conv1 bias
            pl.BlockSpec((Cout, 1), bcast2),                     # gn2 gamma
            pl.BlockSpec((Cout, 1), bcast2),                     # gn2 beta
            pl.BlockSpec((Cout, Cout), bcast2),                  # group mask 2
            pl.BlockSpec((3, 3, Cout, Cout), lambda b: (0, 0, 0, 0)),  # conv2 w^T (bf16)
            pl.BlockSpec((Cout, 1), bcast2),                     # conv2 bias
            pl.BlockSpec((Cout, Cin), bcast2),                   # shortcut w^T (bf16)
            pl.BlockSpec((Cout, 1), bcast2),                     # shortcut bias
        ],
        out_specs=pl.BlockSpec((1, Cout, HW), lambda b: (b, 0, 0)),
        scratch_shapes=[
            pltpu.VMEM((Cin, padw), jnp.float32),                # stage-1 flat halo
            pltpu.VMEM((Cout, padw), jnp.float32),               # stage-2 flat halo
        ],
        compiler_params=pltpu.CompilerParams(
            dimension_semantics=("parallel",)),
    )(x_cf, t_col, masks, g1, b1, gm1, ws, bs, wh, bh, w1t, c1b,
      g2, b2, gm2, w2t, c2b, swt, sb)

    return out_cf.reshape(B, Cout, H, W)                         # free reshape, NCHW out


# --------------------------------------------------------------------------
# pure-JAX reference (f32, NCHW) used for a sanity check
# --------------------------------------------------------------------------
def _ref_forward(x, t, p, groups=8):
    B, Cin, H, W = x.shape
    Cout = p["conv1_w"].shape[3]

    def gn(v, gamma, beta):
        Bv, Cv = v.shape[0], v.shape[1]
        vr = v.reshape(Bv, groups, -1)
        mean = vr.mean(-1, keepdims=True)
        var = vr.var(-1, keepdims=True)
        vn = ((vr - mean) * lax.rsqrt(var + EPS)).reshape(v.shape)
        return vn * gamma.reshape(1, Cv, 1, 1) + beta.reshape(1, Cv, 1, 1)

    def silu(v):
        return v * jax.nn.sigmoid(v)

    def conv(v, w, b):
        o = lax.conv_general_dilated(v, w, (1, 1), "SAME",
                                     dimension_numbers=("NCHW", "HWIO", "NCHW"))
        return o + b.reshape(1, -1, 1, 1)

    x = x.astype(jnp.float32)
    h = conv(silu(gn(x, p["gn1_w"], p["gn1_b"])), p["conv1_w"], p["conv1_b"])
    te = silu(t.astype(jnp.float32)) @ p["mlp_w"] + p["mlp_b"]
    scale = te[:, :Cout].reshape(B, Cout, 1, 1)
    shift = te[:, Cout:].reshape(B, Cout, 1, 1)
    h = h * (1.0 + scale) + shift
    h = conv(silu(gn(h, p["gn2_w"], p["gn2_b"])), p["conv2_w"], p["conv2_b"])
    sc = jnp.einsum("bchw,cd->bdhw", x, p["short_w"]) + p["short_b"].reshape(1, -1, 1, 1)
    return h + sc


if __name__ == "__main__":
    B, Cin, Cout, T, H, W = 2, 8, 16, 32, 16, 16   # GroupNorm(8, C) => C % 8 == 0

    key = jax.random.PRNGKey(0)
    ks = jax.random.split(key, 14)
    params = {
        "gn1_w": 1.0 + 0.1 * jax.random.normal(ks[0], (Cin,), jnp.float32),
        "gn1_b": 0.1 * jax.random.normal(ks[1], (Cin,), jnp.float32),
        "conv1_w": 0.2 * jax.random.normal(ks[2], (3, 3, Cin, Cout), jnp.float32),
        "conv1_b": 0.1 * jax.random.normal(ks[3], (Cout,), jnp.float32),
        "mlp_w": 0.2 * jax.random.normal(ks[4], (T, 2 * Cout), jnp.float32),
        "mlp_b": 0.1 * jax.random.normal(ks[5], (2 * Cout,), jnp.float32),
        "gn2_w": 1.0 + 0.1 * jax.random.normal(ks[6], (Cout,), jnp.float32),
        "gn2_b": 0.1 * jax.random.normal(ks[7], (Cout,), jnp.float32),
        "conv2_w": 0.2 * jax.random.normal(ks[8], (3, 3, Cout, Cout), jnp.float32),
        "conv2_b": 0.1 * jax.random.normal(ks[9], (Cout,), jnp.float32),
        "short_w": 0.3 * jax.random.normal(ks[10], (Cin, Cout), jnp.float32),
        "short_b": 0.1 * jax.random.normal(ks[11], (Cout,), jnp.float32),
    }
    x = jax.random.normal(ks[12], (B, Cin, H, W), jnp.float32)       # NCHW, like PyTorch
    time_emb = jax.random.normal(ks[13], (B, T), jnp.float32)

    fwd = jax.jit(lambda a, b: res_block_forward(a, b, params))
    out = jax.block_until_ready(fwd(x, time_emb))

    ref = jax.block_until_ready(_ref_forward(x, time_emb, params))
    assert out.shape == (B, Cout, H, W), out.shape
    err = float(jnp.max(jnp.abs(out - ref)))
    # bf16 MXU operands with f32 accumulation -> small bounded drift vs the f32 reference
    assert jnp.allclose(out, ref, atol=5e-2, rtol=5e-2), err

    print("KERNEL_OK")
</pallas_src>

<mosaic_0001>
module attributes {stable_mosaic.version = 11 : i64} {
  func.func @res_block_kernel(%arg0: i32, %arg1: memref<1x8x256xf32, #tpu.memory_space<vmem>>, %arg2: memref<1x32x1xf32, #tpu.memory_space<vmem>>, %arg3: memref<9x256xf32, #tpu.memory_space<vmem>>, %arg4: memref<8x1xf32, #tpu.memory_space<vmem>>, %arg5: memref<8x1xf32, #tpu.memory_space<vmem>>, %arg6: memref<8x8xf32, #tpu.memory_space<vmem>>, %arg7: memref<16x32xf32, #tpu.memory_space<vmem>>, %arg8: memref<16x1xf32, #tpu.memory_space<vmem>>, %arg9: memref<16x32xf32, #tpu.memory_space<vmem>>, %arg10: memref<16x1xf32, #tpu.memory_space<vmem>>, %arg11: memref<3x3x16x8xbf16, #tpu.memory_space<vmem>>, %arg12: memref<16x1xf32, #tpu.memory_space<vmem>>, %arg13: memref<16x1xf32, #tpu.memory_space<vmem>>, %arg14: memref<16x1xf32, #tpu.memory_space<vmem>>, %arg15: memref<16x16xf32, #tpu.memory_space<vmem>>, %arg16: memref<3x3x16x16xbf16, #tpu.memory_space<vmem>>, %arg17: memref<16x1xf32, #tpu.memory_space<vmem>>, %arg18: memref<16x8xbf16, #tpu.memory_space<vmem>>, %arg19: memref<16x1xf32, #tpu.memory_space<vmem>>, %arg20: memref<1x16x256xf32, #tpu.memory_space<vmem>>, %arg21: memref<8x290xf32, #tpu.memory_space<vmem>>, %arg22: memref<16x290xf32, #tpu.memory_space<vmem>>) attributes {dimension_semantics = [#tpu.dimension_semantics<parallel>], iteration_bounds = array<i64: 2>, scalar_prefetch = 0 : i64, scratch_operands = 2 : i64, tpu.core_type = #tpu.core_type<tc>, window_params = [{transform_indices = @transform_0, window_bounds = array<i64: 1, 8, 256>}, {transform_indices = @transform_1, window_bounds = array<i64: 1, 32, 1>}, {pipeline_mode = #tpu.pipeline_mode<synchronous>, transform_indices = @transform_2, window_bounds = array<i64: 9, 256>}, {pipeline_mode = #tpu.pipeline_mode<synchronous>, transform_indices = @transform_3, window_bounds = array<i64: 8, 1>}, {pipeline_mode = #tpu.pipeline_mode<synchronous>, transform_indices = @transform_4, window_bounds = array<i64: 8, 1>}, {pipeline_mode = #tpu.pipeline_mode<synchronous>, transform_indices = @transform_5, window_bounds = array<i64: 8, 8>}, {pipeline_mode = #tpu.pipeline_mode<synchronous>, transform_indices = @transform_6, window_bounds = array<i64: 16, 32>}, {pipeline_mode = #tpu.pipeline_mode<synchronous>, transform_indices = @transform_7, window_bounds = array<i64: 16, 1>}, {pipeline_mode = #tpu.pipeline_mode<synchronous>, transform_indices = @transform_8, window_bounds = array<i64: 16, 32>}, {pipeline_mode = #tpu.pipeline_mode<synchronous>, transform_indices = @transform_9, window_bounds = array<i64: 16, 1>}, {pipeline_mode = #tpu.pipeline_mode<synchronous>, transform_indices = @transform_10, window_bounds = array<i64: 3, 3, 16, 8>}, {pipeline_mode = #tpu.pipeline_mode<synchronous>, transform_indices = @transform_11, window_bounds = array<i64: 16, 1>}, {pipeline_mode = #tpu.pipeline_mode<synchronous>, transform_indices = @transform_12, window_bounds = array<i64: 16, 1>}, {pipeline_mode = #tpu.pipeline_mode<synchronous>, transform_indices = @transform_13, window_bounds = array<i64: 16, 1>}, {pipeline_mode = #tpu.pipeline_mode<synchronous>, transform_indices = @transform_14, window_bounds = array<i64: 16, 16>}, {pipeline_mode = #tpu.pipeline_mode<synchronous>, transform_indices = @transform_15, window_bounds = array<i64: 3, 3, 16, 16>}, {pipeline_mode = #tpu.pipeline_mode<synchronous>, transform_indices = @transform_16, window_bounds = array<i64: 16, 1>}, {pipeline_mode = #tpu.pipeline_mode<synchronous>, transform_indices = @transform_17, window_bounds = array<i64: 16, 8>}, {pipeline_mode = #tpu.pipeline_mode<synchronous>, transform_indices = @transform_18, window_bounds = array<i64: 16, 1>}, {transform_indices = @transform_19, window_bounds = array<i64: 1, 16, 256>}]} {
    %cst = arith.constant 0.000000e+00 : f32
    %0 = vector.broadcast %cst : f32 to vector<8x290xf32>
    %c0 = arith.constant 0 : index
    %c0_0 = arith.constant 0 : index
    %1 = vector.load %arg21[%c0, %c0_0] : memref<8x290xf32, #tpu.memory_space<vmem>>, vector<8x290xf32>
    tpu.vector_store %arg21[%c0, %c0_0], %0 {strides = array<i32>} : memref<8x290xf32, #tpu.memory_space<vmem>>, vector<8x290xf32>,
    %cst_1 = arith.constant 0.000000e+00 : f32
    %2 = vector.broadcast %cst_1 : f32 to vector<16x290xf32>
    %c0_2 = arith.constant 0 : index
    %c0_3 = arith.constant 0 : index
    %3 = vector.load %arg22[%c0_2, %c0_3] : memref<16x290xf32, #tpu.memory_space<vmem>>, vector<16x290xf32>
    tpu.vector_store %arg22[%c0_2, %c0_3], %2 {strides = array<i32>} : memref<16x290xf32, #tpu.memory_space<vmem>>, vector<16x290xf32>,
    %c0_4 = arith.constant 0 : index
    %c0_5 = arith.constant 0 : index
    %c0_6 = arith.constant 0 : index
    %4 = vector.load %arg1[%c0_4, %c0_5, %c0_6] : memref<1x8x256xf32, #tpu.memory_space<vmem>>, vector<1x8x256xf32>
    %5 = vector.shape_cast %4 : vector<1x8x256xf32> to vector<8x256xf32>
    %c0_7 = arith.constant 0 : index
    %c0_8 = arith.constant 0 : index
    %6 = vector.load %arg6[%c0_7, %c0_8] : memref<8x8xf32, #tpu.memory_space<vmem>>, vector<8x8xf32>
    %c0_9 = arith.constant 0 : index
    %c0_10 = arith.constant 0 : index
    %7 = vector.load %arg4[%c0_9, %c0_10] : memref<8x1xf32, #tpu.memory_space<vmem>>, vector<8x1xf32>
    %c0_11 = arith.constant 0 : index
    %c0_12 = arith.constant 0 : index
    %8 = vector.load %arg5[%c0_11, %c0_12] : memref<8x1xf32, #tpu.memory_space<vmem>>, vector<8x1xf32>
    %cst_13 = arith.constant dense<0.000000e+00> : vector<8x256xf32>
    %9 = tpu.matmul %6, %5, %cst_13 {dimension_numbers = #tpu.dot_dimension_numbers<[1], [0], [0], [1], [0, 0, 1, 1], [], []>} : vector<8x8xf32>, vector<8x256xf32>, vector<8x256xf32> -> vector<8x256xf32>
    %cst_14 = arith.constant dense<0.000000e+00> : vector<8xf32>
    %10 = vector.multi_reduction <add>, %9, %cst_14 [1] : vector<8x256xf32> to vector<8xf32>
    %11 = vector.shape_cast %10 : vector<8xf32> to vector<8x1xf32>
    %cst_15 = arith.constant 3.906250e-03 : f32
    %12 = vector.broadcast %cst_15 : f32 to vector<8x1xf32>
    %13 = arith.mulf %11, %12 : vector<8x1xf32>
    %14 = vector.broadcast %13 : vector<8x1xf32> to vector<8x256xf32>
    %15 = arith.subf %5, %14 : vector<8x256xf32>
    %16 = arith.mulf %15, %15 : vector<8x256xf32>
    %cst_16 = arith.constant dense<0.000000e+00> : vector<8x256xf32>
    %17 = tpu.matmul %6, %16, %cst_16 {dimension_numbers = #tpu.dot_dimension_numbers<[1], [0], [0], [1], [0, 0, 1, 1], [], []>} : vector<8x8xf32>, vector<8x256xf32>, vector<8x256xf32> -> vector<8x256xf32>
    %cst_17 = arith.constant dense<0.000000e+00> : vector<8xf32>
    %18 = vector.multi_reduction <add>, %17, %cst_17 [1] : vector<8x256xf32> to vector<8xf32>
    %19 = vector.shape_cast %18 : vector<8xf32> to vector<8x1xf32>
    %cst_18 = arith.constant 3.906250e-03 : f32
    %20 = vector.broadcast %cst_18 : f32 to vector<8x1xf32>
    %21 = arith.mulf %19, %20 : vector<8x1xf32>
    %cst_19 = arith.constant 9.99999974E-6 : f32
    %22 = vector.broadcast %cst_19 : f32 to vector<8x1xf32>
    %23 = arith.addf %21, %22 : vector<8x1xf32>
    %24 = math.rsqrt %23 : vector<8x1xf32>
    %25 = vector.broadcast %24 : vector<8x1xf32> to vector<8x256xf32>
    %26 = arith.mulf %15, %25 : vector<8x256xf32>
    %27 = vector.broadcast %7 : vector<8x1xf32> to vector<8x256xf32>
    %28 = arith.mulf %26, %27 : vector<8x256xf32>
    %29 = vector.broadcast %8 : vector<8x1xf32> to vector<8x256xf32>
    %30 = arith.addf %28, %29 : vector<8x256xf32>
    %31 = arith.negf %30 : vector<8x256xf32>
    %32 = math.exp %31 : vector<8x256xf32>
    %cst_20 = arith.constant 1.000000e+00 : f32
    %33 = vector.broadcast %cst_20 : f32 to vector<8x256xf32>
    %34 = arith.addf %33, %32 : vector<8x256xf32>
    %35 = arith.divf %33, %34 : vector<8x256xf32>
    %36 = arith.mulf %30, %35 : vector<8x256xf32>
    %c0_21 = arith.constant 0 : index
    %c17 = arith.constant 17 : index
    %37 = vector.load %arg21[%c0_21, %c17] : memref<8x290xf32, #tpu.memory_space<vmem>>, vector<8x256xf32>
    tpu.vector_store %arg21[%c0_21, %c17], %36 {strides = array<i32>} : memref<8x290xf32, #tpu.memory_space<vmem>>, vector<8x256xf32>,
    %c0_22 = arith.constant 0 : index
    %c0_23 = arith.constant 0 : index
    %c0_24 = arith.constant 0 : index
    %38 = vector.load %arg2[%c0_22, %c0_23, %c0_24] : memref<1x32x1xf32, #tpu.memory_space<vmem>>, vector<1x32x1xf32>
    %39 = vector.shape_cast %38 : vector<1x32x1xf32> to vector<32x1xf32>
    %40 = arith.negf %39 : vector<32x1xf32>
    %41 = math.exp %40 : vector<32x1xf32>
    %cst_25 = arith.constant 1.000000e+00 : f32
    %42 = vector.broadcast %cst_25 : f32 to vector<32x1xf32>
    %43 = arith.addf %42, %41 : vector<32x1xf32>
    %44 = arith.divf %42, %43 : vector<32x1xf32>
    %45 = arith.mulf %39, %44 : vector<32x1xf32>
    %46 = vector.shape_cast %45 : vector<32x1xf32> to vector<32x1xf32>
    %47 = vector.broadcast %46 : vector<32x1xf32> to vector<32x256xf32>
    %c0_26 = arith.constant 0 : index
    %c0_27 = arith.constant 0 : index
    %48 = vector.load %arg7[%c0_26, %c0_27] : memref<16x32xf32, #tpu.memory_space<vmem>>, vector<16x32xf32>
    %cst_28 = arith.constant dense<0.000000e+00> : vector<16x256xf32>
    %49 = tpu.matmul %48, %47, %cst_28 {dimension_numbers = #tpu.dot_dimension_numbers<[1], [0], [0], [1], [0, 0, 1, 1], [], []>} : vector<16x32xf32>, vector<32x256xf32>, vector<16x256xf32> -> vector<16x256xf32>
    %c0_29 = arith.constant 0 : index
    %c0_30 = arith.constant 0 : index
    %50 = vector.load %arg8[%c0_29, %c0_30] : memref<16x1xf32, #tpu.memory_space<vmem>>, vector<16x1xf32>
    %51 = vector.broadcast %50 : vector<16x1xf32> to vector<16x256xf32>
    %52 = arith.addf %49, %51 : vector<16x256xf32>
    %c0_31 = arith.constant 0 : index
    %c0_32 = arith.constant 0 : index
    %53 = vector.load %arg9[%c0_31, %c0_32] : memref<16x32xf32, #tpu.memory_space<vmem>>, vector<16x32xf32>
    %cst_33 = arith.constant dense<0.000000e+00> : vector<16x256xf32>
    %54 = tpu.matmul %53, %47, %cst_33 {dimension_numbers = #tpu.dot_dimension_numbers<[1], [0], [0], [1], [0, 0, 1, 1], [], []>} : vector<16x32xf32>, vector<32x256xf32>, vector<16x256xf32> -> vector<16x256xf32>
    %c0_34 = arith.constant 0 : index
    %c0_35 = arith.constant 0 : index
    %55 = vector.load %arg10[%c0_34, %c0_35] : memref<16x1xf32, #tpu.memory_space<vmem>>, vector<16x1xf32>
    %56 = vector.broadcast %55 : vector<16x1xf32> to vector<16x256xf32>
    %57 = arith.addf %54, %56 : vector<16x256xf32>
    %cst_36 = arith.constant 0.000000e+00 : f32
    %58 = vector.broadcast %cst_36 : f32 to vector<16x256xf32>
    %c0_37 = arith.constant 0 : index
    %c0_38 = arith.constant 0 : index
    %59 = vector.load %arg21[%c0_37, %c0_38] : memref<8x290xf32, #tpu.memory_space<vmem>>, vector<8x256xf32>
    %c0_39 = arith.constant 0 : index
    %c0_40 = arith.constant 0 : index
    %60 = vector.load %arg3[%c0_39, %c0_40] : memref<9x256xf32, #tpu.memory_space<vmem>>, vector<1x256xf32>
    %cst_41 = arith.constant 5.000000e-01 : f32
    %61 = vector.broadcast %cst_41 : f32 to vector<1x256xf32>
    %62 = arith.cmpf ogt, %60, %61 : vector<1x256xf32>
    %cst_42 = arith.constant 0.000000e+00 : f32
    %63 = vector.shape_cast %62 : vector<1x256xi1> to vector<1x256xi1>
    %64 = vector.broadcast %63 : vector<1x256xi1> to vector<8x256xi1>
    %65 = vector.broadcast %cst_42 : f32 to vector<8x256xf32>
    %66 = arith.select %64, %59, %65 : vector<8x256xi1>, vector<8x256xf32>
    %67 = arith.truncf %66 : vector<8x256xf32> to vector<8x256xbf16>
    %c0_43 = arith.constant 0 : index
    %c0_44 = arith.constant 0 : index
    %c0_45 = arith.constant 0 : index
    %c0_46 = arith.constant 0 : index
    %68 = vector.load %arg11[%c0_43, %c0_44, %c0_45, %c0_46] : memref<3x3x16x8xbf16, #tpu.memory_space<vmem>>, vector<1x1x16x8xbf16>
    %69 = vector.shape_cast %68 : vector<1x1x16x8xbf16> to vector<16x8xbf16>
    %cst_47 = arith.constant dense<0.000000e+00> : vector<16x256xf32>
    %70 = tpu.matmul %69, %67, %cst_47 {dimension_numbers = #tpu.dot_dimension_numbers<[1], [0], [0], [1], [0, 0, 1, 1], [], []>} : vector<16x8xbf16>, vector<8x256xbf16>, vector<16x256xf32> -> vector<16x256xf32>
    %71 = arith.addf %58, %70 : vector<16x256xf32>
    %c0_48 = arith.constant 0 : index
    %c1 = arith.constant 1 : index
    %72 = vector.load %arg21[%c0_48, %c1] : memref<8x290xf32, #tpu.memory_space<vmem>>, vector<8x256xf32>
    %c1_49 = arith.constant 1 : index
    %c0_50 = arith.constant 0 : index
    %73 = vector.load %arg3[%c1_49, %c0_50] : memref<9x256xf32, #tpu.memory_space<vmem>>, vector<1x256xf32>
    %cst_51 = arith.constant 5.000000e-01 : f32
    %74 = vector.broadcast %cst_51 : f32 to vector<1x256xf32>
    %75 = arith.cmpf ogt, %73, %74 : vector<1x256xf32>
    %cst_52 = arith.constant 0.000000e+00 : f32
    %76 = vector.shape_cast %75 : vector<1x256xi1> to vector<1x256xi1>
    %77 = vector.broadcast %76 : vector<1x256xi1> to vector<8x256xi1>
    %78 = vector.broadcast %cst_52 : f32 to vector<8x256xf32>
    %79 = arith.select %77, %72, %78 : vector<8x256xi1>, vector<8x256xf32>
    %80 = arith.truncf %79 : vector<8x256xf32> to vector<8x256xbf16>
    %c0_53 = arith.constant 0 : index
    %c1_54 = arith.constant 1 : index
    %c0_55 = arith.constant 0 : index
    %c0_56 = arith.constant 0 : index
    %81 = vector.load %arg11[%c0_53, %c1_54, %c0_55, %c0_56] : memref<3x3x16x8xbf16, #tpu.memory_space<vmem>>, vector<1x1x16x8xbf16>
    %82 = vector.shape_cast %81 : vector<1x1x16x8xbf16> to vector<16x8xbf16>
    %cst_57 = arith.constant dense<0.000000e+00> : vector<16x256xf32>
    %83 = tpu.matmul %82, %80, %cst_57 {dimension_numbers = #tpu.dot_dimension_numbers<[1], [0], [0], [1], [0, 0, 1, 1], [], []>} : vector<16x8xbf16>, vector<8x256xbf16>, vector<16x256xf32> -> vector<16x256xf32>
    %84 = arith.addf %71, %83 : vector<16x256xf32>
    %c0_58 = arith.constant 0 : index
    %c2 = arith.constant 2 : index
    %85 = vector.load %arg21[%c0_58, %c2] : memref<8x290xf32, #tpu.memory_space<vmem>>, vector<8x256xf32>
    %c2_59 = arith.constant 2 : index
    %c0_60 = arith.constant 0 : index
    %86 = vector.load %arg3[%c2_59, %c0_60] : memref<9x256xf32, #tpu.memory_space<vmem>>, vector<1x256xf32>
    %cst_61 = arith.constant 5.000000e-01 : f32
    %87 = vector.broadcast %cst_61 : f32 to vector<1x256xf32>
    %88 = arith.cmpf ogt, %86, %87 : vector<1x256xf32>
    %cst_62 = arith.constant 0.000000e+00 : f32
    %89 = vector.shape_cast %88 : vector<1x256xi1> to vector<1x256xi1>
    %90 = vector.broadcast %89 : vector<1x256xi1> to vector<8x256xi1>
    %91 = vector.broadcast %cst_62 : f32 to vector<8x256xf32>
    %92 = arith.select %90, %85, %91 : vector<8x256xi1>, vector<8x256xf32>
    %93 = arith.truncf %92 : vector<8x256xf32> to vector<8x256xbf16>
    %c0_63 = arith.constant 0 : index
    %c2_64 = arith.constant 2 : index
    %c0_65 = arith.constant 0 : index
    %c0_66 = arith.constant 0 : index
    %94 = vector.load %arg11[%c0_63, %c2_64, %c0_65, %c0_66] : memref<3x3x16x8xbf16, #tpu.memory_space<vmem>>, vector<1x1x16x8xbf16>
    %95 = vector.shape_cast %94 : vector<1x1x16x8xbf16> to vector<16x8xbf16>
    %cst_67 = arith.constant dense<0.000000e+00> : vector<16x256xf32>
    %96 = tpu.matmul %95, %93, %cst_67 {dimension_numbers = #tpu.dot_dimension_numbers<[1], [0], [0], [1], [0, 0, 1, 1], [], []>} : vector<16x8xbf16>, vector<8x256xbf16>, vector<16x256xf32> -> vector<16x256xf32>
    %97 = arith.addf %84, %96 : vector<16x256xf32>
    %c0_68 = arith.constant 0 : index
    %c16 = arith.constant 16 : index
    %98 = vector.load %arg21[%c0_68, %c16] : memref<8x290xf32, #tpu.memory_space<vmem>>, vector<8x256xf32>
    %c3 = arith.constant 3 : index
    %c0_69 = arith.constant 0 : index
    %99 = vector.load %arg3[%c3, %c0_69] : memref<9x256xf32, #tpu.memory_space<vmem>>, vector<1x256xf32>
    %cst_70 = arith.constant 5.000000e-01 : f32
    %100 = vector.broadcast %cst_70 : f32 to vector<1x256xf32>
    %101 = arith.cmpf ogt, %99, %100 : vector<1x256xf32>
    %cst_71 = arith.constant 0.000000e+00 : f32
    %102 = vector.shape_cast %101 : vector<1x256xi1> to vector<1x256xi1>
    %103 = vector.broadcast %102 : vector<1x256xi1> to vector<8x256xi1>
    %104 = vector.broadcast %cst_71 : f32 to vector<8x256xf32>
    %105 = arith.select %103, %98, %104 : vector<8x256xi1>, vector<8x256xf32>
    %106 = arith.truncf %105 : vector<8x256xf32> to vector<8x256xbf16>
    %c1_72 = arith.constant 1 : index
    %c0_73 = arith.constant 0 : index
    %c0_74 = arith.constant 0 : index
    %c0_75 = arith.constant 0 : index
    %107 = vector.load %arg11[%c1_72, %c0_73, %c0_74, %c0_75] : memref<3x3x16x8xbf16, #tpu.memory_space<vmem>>, vector<1x1x16x8xbf16>
    %108 = vector.shape_cast %107 : vector<1x1x16x8xbf16> to vector<16x8xbf16>
    %cst_76 = arith.constant dense<0.000000e+00> : vector<16x256xf32>
    %109 = tpu.matmul %108, %106, %cst_76 {dimension_numbers = #tpu.dot_dimension_numbers<[1], [0], [0], [1], [0, 0, 1, 1], [], []>} : vector<16x8xbf16>, vector<8x256xbf16>, vector<16x256xf32> -> vector<16x256xf32>
    %110 = arith.addf %97, %109 : vector<16x256xf32>
    %c0_77 = arith.constant 0 : index
    %c17_78 = arith.constant 17 : index
    %111 = vector.load %arg21[%c0_77, %c17_78] : memref<8x290xf32, #tpu.memory_space<vmem>>, vector<8x256xf32>
    %c4 = arith.constant 4 : index
    %c0_79 = arith.constant 0 : index
    %112 = vector.load %arg3[%c4, %c0_79] : memref<9x256xf32, #tpu.memory_space<vmem>>, vector<1x256xf32>
    %cst_80 = arith.constant 5.000000e-01 : f32
    %113 = vector.broadcast %cst_80 : f32 to vector<1x256xf32>
    %114 = arith.cmpf ogt, %112, %113 : vector<1x256xf32>
    %cst_81 = arith.constant 0.000000e+00 : f32
    %115 = vector.shape_cast %114 : vector<1x256xi1> to vector<1x256xi1>
    %116 = vector.broadcast %115 : vector<1x256xi1> to vector<8x256xi1>
    %117 = vector.broadcast %cst_81 : f32 to vector<8x256xf32>
    %118 = arith.select %116, %111, %117 : vector<8x256xi1>, vector<8x256xf32>
    %119 = arith.truncf %118 : vector<8x256xf32> to vector<8x256xbf16>
    %c1_82 = arith.constant 1 : index
    %c1_83 = arith.constant 1 : index
    %c0_84 = arith.constant 0 : index
    %c0_85 = arith.constant 0 : index
    %120 = vector.load %arg11[%c1_82, %c1_83, %c0_84, %c0_85] : memref<3x3x16x8xbf16, #tpu.memory_space<vmem>>, vector<1x1x16x8xbf16>
    %121 = vector.shape_cast %120 : vector<1x1x16x8xbf16> to vector<16x8xbf16>
    %cst_86 = arith.constant dense<0.000000e+00> : vector<16x256xf32>
    %122 = tpu.matmul %121, %119, %cst_86 {dimension_numbers = #tpu.dot_dimension_numbers<[1], [0], [0], [1], [0, 0, 1, 1], [], []>} : vector<16x8xbf16>, vector<8x256xbf16>, vector<16x256xf32> -> vector<16x256xf32>
    %123 = arith.addf %110, %122 : vector<16x256xf32>
    %c0_87 = arith.constant 0 : index
    %c18 = arith.constant 18 : index
    %124 = vector.load %arg21[%c0_87, %c18] : memref<8x290xf32, #tpu.memory_space<vmem>>, vector<8x256xf32>
    %c5 = arith.constant 5 : index
    %c0_88 = arith.constant 0 : index
    %125 = vector.load %arg3[%c5, %c0_88] : memref<9x256xf32, #tpu.memory_space<vmem>>, vector<1x256xf32>
    %cst_89 = arith.constant 5.000000e-01 : f32
    %126 = vector.broadcast %cst_89 : f32 to vector<1x256xf32>
    %127 = arith.cmpf ogt, %125, %126 : vector<1x256xf32>
    %cst_90 = arith.constant 0.000000e+00 : f32
    %128 = vector.shape_cast %127 : vector<1x256xi1> to vector<1x256xi1>
    %129 = vector.broadcast %128 : vector<1x256xi1> to vector<8x256xi1>
    %130 = vector.broadcast %cst_90 : f32 to vector<8x256xf32>
    %131 = arith.select %129, %124, %130 : vector<8x256xi1>, vector<8x256xf32>
    %132 = arith.truncf %131 : vector<8x256xf32> to vector<8x256xbf16>
    %c1_91 = arith.constant 1 : index
    %c2_92 = arith.constant 2 : index
    %c0_93 = arith.constant 0 : index
    %c0_94 = arith.constant 0 : index
    %133 = vector.load %arg11[%c1_91, %c2_92, %c0_93, %c0_94] : memref<3x3x16x8xbf16, #tpu.memory_space<vmem>>, vector<1x1x16x8xbf16>
    %134 = vector.shape_cast %133 : vector<1x1x16x8xbf16> to vector<16x8xbf16>
    %cst_95 = arith.constant dense<0.000000e+00> : vector<16x256xf32>
    %135 = tpu.matmul %134, %132, %cst_95 {dimension_numbers = #tpu.dot_dimension_numbers<[1], [0], [0], [1], [0, 0, 1, 1], [], []>} : vector<16x8xbf16>, vector<8x256xbf16>, vector<16x256xf32> -> vector<16x256xf32>
    %136 = arith.addf %123, %135 : vector<16x256xf32>
    %c0_96 = arith.constant 0 : index
    %c32 = arith.constant 32 : index
    %137 = vector.load %arg21[%c0_96, %c32] : memref<8x290xf32, #tpu.memory_space<vmem>>, vector<8x256xf32>
    %c6 = arith.constant 6 : index
    %c0_97 = arith.constant 0 : index
    %138 = vector.load %arg3[%c6, %c0_97] : memref<9x256xf32, #tpu.memory_space<vmem>>, vector<1x256xf32>
    %cst_98 = arith.constant 5.000000e-01 : f32
    %139 = vector.broadcast %cst_98 : f32 to vector<1x256xf32>
    %140 = arith.cmpf ogt, %138, %139 : vector<1x256xf32>
    %cst_99 = arith.constant 0.000000e+00 : f32
    %141 = vector.shape_cast %140 : vector<1x256xi1> to vector<1x256xi1>
    %142 = vector.broadcast %141 : vector<1x256xi1> to vector<8x256xi1>
    %143 = vector.broadcast %cst_99 : f32 to vector<8x256xf32>
    %144 = arith.select %142, %137, %143 : vector<8x256xi1>, vector<8x256xf32>
    %145 = arith.truncf %144 : vector<8x256xf32> to vector<8x256xbf16>
    %c2_100 = arith.constant 2 : index
    %c0_101 = arith.constant 0 : index
    %c0_102 = arith.constant 0 : index
    %c0_103 = arith.constant 0 : index
    %146 = vector.load %arg11[%c2_100, %c0_101, %c0_102, %c0_103] : memref<3x3x16x8xbf16, #tpu.memory_space<vmem>>, vector<1x1x16x8xbf16>
    %147 = vector.shape_cast %146 : vector<1x1x16x8xbf16> to vector<16x8xbf16>
    %cst_104 = arith.constant dense<0.000000e+00> : vector<16x256xf32>
    %148 = tpu.matmul %147, %145, %cst_104 {dimension_numbers = #tpu.dot_dimension_numbers<[1], [0], [0], [1], [0, 0, 1, 1], [], []>} : vector<16x8xbf16>, vector<8x256xbf16>, vector<16x256xf32> -> vector<16x256xf32>
    %149 = arith.addf %136, %148 : vector<16x256xf32>
    %c0_105 = arith.constant 0 : index
    %c33 = arith.constant 33 : index
    %150 = vector.load %arg21[%c0_105, %c33] : memref<8x290xf32, #tpu.memory_space<vmem>>, vector<8x256xf32>
    %c7 = arith.constant 7 : index
    %c0_106 = arith.constant 0 : index
    %151 = vector.load %arg3[%c7, %c0_106] : memref<9x256xf32, #tpu.memory_space<vmem>>, vector<1x256xf32>
    %cst_107 = arith.constant 5.000000e-01 : f32
    %152 = vector.broadcast %cst_107 : f32 to vector<1x256xf32>
    %153 = arith.cmpf ogt, %151, %152 : vector<1x256xf32>
    %cst_108 = arith.constant 0.000000e+00 : f32
    %154 = vector.shape_cast %153 : vector<1x256xi1> to vector<1x256xi1>
    %155 = vector.broadcast %154 : vector<1x256xi1> to vector<8x256xi1>
    %156 = vector.broadcast %cst_108 : f32 to vector<8x256xf32>
    %157 = arith.select %155, %150, %156 : vector<8x256xi1>, vector<8x256xf32>
    %158 = arith.truncf %157 : vector<8x256xf32> to vector<8x256xbf16>
    %c2_109 = arith.constant 2 : index
    %c1_110 = arith.constant 1 : index
    %c0_111 = arith.constant 0 : index
    %c0_112 = arith.constant 0 : index
    %159 = vector.load %arg11[%c2_109, %c1_110, %c0_111, %c0_112] : memref<3x3x16x8xbf16, #tpu.memory_space<vmem>>, vector<1x1x16x8xbf16>
    %160 = vector.shape_cast %159 : vector<1x1x16x8xbf16> to vector<16x8xbf16>
    %cst_113 = arith.constant dense<0.000000e+00> : vector<16x256xf32>
    %161 = tpu.matmul %160, %158, %cst_113 {dimension_numbers = #tpu.dot_dimension_numbers<[1], [0], [0], [1], [0, 0, 1, 1], [], []>} : vector<16x8xbf16>, vector<8x256xbf16>, vector<16x256xf32> -> vector<16x256xf32>
    %162 = arith.addf %149, %161 : vector<16x256xf32>
    %c0_114 = arith.constant 0 : index
    %c34 = arith.constant 34 : index
    %163 = vector.load %arg21[%c0_114, %c34] : memref<8x290xf32, #tpu.memory_space<vmem>>, vector<8x256xf32>
    %c8 = arith.constant 8 : index
    %c0_115 = arith.constant 0 : index
    %164 = vector.load %arg3[%c8, %c0_115] : memref<9x256xf32, #tpu.memory_space<vmem>>, vector<1x256xf32>
    %cst_116 = arith.constant 5.000000e-01 : f32
    %165 = vector.broadcast %cst_116 : f32 to vector<1x256xf32>
    %166 = arith.cmpf ogt, %164, %165 : vector<1x256xf32>
    %cst_117 = arith.constant 0.000000e+00 : f32
    %167 = vector.shape_cast %166 : vector<1x256xi1> to vector<1x256xi1>
    %168 = vector.broadcast %167 : vector<1x256xi1> to vector<8x256xi1>
    %169 = vector.broadcast %cst_117 : f32 to vector<8x256xf32>
    %170 = arith.select %168, %163, %169 : vector<8x256xi1>, vector<8x256xf32>
    %171 = arith.truncf %170 : vector<8x256xf32> to vector<8x256xbf16>
    %c2_118 = arith.constant 2 : index
    %c2_119 = arith.constant 2 : index
    %c0_120 = arith.constant 0 : index
    %c0_121 = arith.constant 0 : index
    %172 = vector.load %arg11[%c2_118, %c2_119, %c0_120, %c0_121] : memref<3x3x16x8xbf16, #tpu.memory_space<vmem>>, vector<1x1x16x8xbf16>
    %173 = vector.shape_cast %172 : vector<1x1x16x8xbf16> to vector<16x8xbf16>
    %cst_122 = arith.constant dense<0.000000e+00> : vector<16x256xf32>
    %174 = tpu.matmul %173, %171, %cst_122 {dimension_numbers = #tpu.dot_dimension_numbers<[1], [0], [0], [1], [0, 0, 1, 1], [], []>} : vector<16x8xbf16>, vector<8x256xbf16>, vector<16x256xf32> -> vector<16x256xf32>
    %175 = arith.addf %162, %174 : vector<16x256xf32>
    %c0_123 = arith.constant 0 : index
    %c0_124 = arith.constant 0 : index
    %176 = vector.load %arg12[%c0_123, %c0_124] : memref<16x1xf32, #tpu.memory_space<vmem>>, vector<16x1xf32>
    %177 = vector.broadcast %176 : vector<16x1xf32> to vector<16x256xf32>
    %178 = arith.addf %175, %177 : vector<16x256xf32>
    %cst_125 = arith.constant 1.000000e+00 : f32
    %179 = vector.broadcast %cst_125 : f32 to vector<16x256xf32>
    %180 = arith.addf %179, %52 : vector<16x256xf32>
    %181 = arith.mulf %178, %180 : vector<16x256xf32>
    %182 = arith.addf %181, %57 : vector<16x256xf32>
    %c0_126 = arith.constant 0 : index
    %c0_127 = arith.constant 0 : index
    %183 = vector.load %arg15[%c0_126, %c0_127] : memref<16x16xf32, #tpu.memory_space<vmem>>, vector<16x16xf32>
    %c0_128 = arith.constant 0 : index
    %c0_129 = arith.constant 0 : index
    %184 = vector.load %arg13[%c0_128, %c0_129] : memref<16x1xf32, #tpu.memory_space<vmem>>, vector<16x1xf32>
    %c0_130 = arith.constant 0 : index
    %c0_131 = arith.constant 0 : index
    %185 = vector.load %arg14[%c0_130, %c0_131] : memref<16x1xf32, #tpu.memory_space<vmem>>, vector<16x1xf32>
    %cst_132 = arith.constant dense<0.000000e+00> : vector<16x256xf32>
    %186 = tpu.matmul %183, %182, %cst_132 {dimension_numbers = #tpu.dot_dimension_numbers<[1], [0], [0], [1], [0, 0, 1, 1], [], []>} : vector<16x16xf32>, vector<16x256xf32>, vector<16x256xf32> -> vector<16x256xf32>
    %cst_133 = arith.constant dense<0.000000e+00> : vector<16xf32>
    %187 = vector.multi_reduction <add>, %186, %cst_133 [1] : vector<16x256xf32> to vector<16xf32>
    %188 = vector.shape_cast %187 : vector<16xf32> to vector<16x1xf32>
    %cst_134 = arith.constant 0.001953125 : f32
    %189 = vector.broadcast %cst_134 : f32 to vector<16x1xf32>
    %190 = arith.mulf %188, %189 : vector<16x1xf32>
    %191 = vector.broadcast %190 : vector<16x1xf32> to vector<16x256xf32>
    %192 = arith.subf %182, %191 : vector<16x256xf32>
    %193 = arith.mulf %192, %192 : vector<16x256xf32>
    %cst_135 = arith.constant dense<0.000000e+00> : vector<16x256xf32>
    %194 = tpu.matmul %183, %193, %cst_135 {dimension_numbers = #tpu.dot_dimension_numbers<[1], [0], [0], [1], [0, 0, 1, 1], [], []>} : vector<16x16xf32>, vector<16x256xf32>, vector<16x256xf32> -> vector<16x256xf32>
    %cst_136 = arith.constant dense<0.000000e+00> : vector<16xf32>
    %195 = vector.multi_reduction <add>, %194, %cst_136 [1] : vector<16x256xf32> to vector<16xf32>
    %196 = vector.shape_cast %195 : vector<16xf32> to vector<16x1xf32>
    %cst_137 = arith.constant 0.001953125 : f32
    %197 = vector.broadcast %cst_137 : f32 to vector<16x1xf32>
    %198 = arith.mulf %196, %197 : vector<16x1xf32>
    %cst_138 = arith.constant 9.99999974E-6 : f32
    %199 = vector.broadcast %cst_138 : f32 to vector<16x1xf32>
    %200 = arith.addf %198, %199 : vector<16x1xf32>
    %201 = math.rsqrt %200 : vector<16x1xf32>
    %202 = vector.broadcast %201 : vector<16x1xf32> to vector<16x256xf32>
    %203 = arith.mulf %192, %202 : vector<16x256xf32>
    %204 = vector.broadcast %184 : vector<16x1xf32> to vector<16x256xf32>
    %205 = arith.mulf %203, %204 : vector<16x256xf32>
    %206 = vector.broadcast %185 : vector<16x1xf32> to vector<16x256xf32>
    %207 = arith.addf %205, %206 : vector<16x256xf32>
    %208 = arith.negf %207 : vector<16x256xf32>
    %209 = math.exp %208 : vector<16x256xf32>
    %cst_139 = arith.constant 1.000000e+00 : f32
    %210 = vector.broadcast %cst_139 : f32 to vector<16x256xf32>
    %211 = arith.addf %210, %209 : vector<16x256xf32>
    %212 = arith.divf %210, %211 : vector<16x256xf32>
    %213 = arith.mulf %207, %212 : vector<16x256xf32>
    %c0_140 = arith.constant 0 : index
    %c17_141 = arith.constant 17 : index
    %214 = vector.load %arg22[%c0_140, %c17_141] : memref<16x290xf32, #tpu.memory_space<vmem>>, vector<16x256xf32>
    tpu.vector_store %arg22[%c0_140, %c17_141], %213 {strides = array<i32>} : memref<16x290xf32, #tpu.memory_space<vmem>>, vector<16x256xf32>,
    %cst_142 = arith.constant 0.000000e+00 : f32
    %215 = vector.broadcast %cst_142 : f32 to vector<16x256xf32>
    %c0_143 = arith.constant 0 : index
    %c0_144 = arith.constant 0 : index
    %216 = vector.load %arg22[%c0_143, %c0_144] : memref<16x290xf32, #tpu.memory_space<vmem>>, vector<16x256xf32>
    %c0_145 = arith.constant 0 : index
    %c0_146 = arith.constant 0 : index
    %217 = vector.load %arg3[%c0_145, %c0_146] : memref<9x256xf32, #tpu.memory_space<vmem>>, vector<1x256xf32>
    %cst_147 = arith.constant 5.000000e-01 : f32
    %218 = vector.broadcast %cst_147 : f32 to vector<1x256xf32>
    %219 = arith.cmpf ogt, %217, %218 : vector<1x256xf32>
    %cst_148 = arith.constant 0.000000e+00 : f32
    %220 = vector.shape_cast %219 : vector<1x256xi1> to vector<1x256xi1>
    %221 = vector.broadcast %220 : vector<1x256xi1> to vector<16x256xi1>
    %222 = vector.broadcast %cst_148 : f32 to vector<16x256xf32>
    %223 = arith.select %221, %216, %222 : vector<16x256xi1>, vector<16x256xf32>
    %224 = arith.truncf %223 : vector<16x256xf32> to vector<16x256xbf16>
    %c0_149 = arith.constant 0 : index
    %c0_150 = arith.constant 0 : index
    %c0_151 = arith.constant 0 : index
    %c0_152 = arith.constant 0 : index
    %225 = vector.load %arg16[%c0_149, %c0_150, %c0_151, %c0_152] : memref<3x3x16x16xbf16, #tpu.memory_space<vmem>>, vector<1x1x16x16xbf16>
    %226 = vector.shape_cast %225 : vector<1x1x16x16xbf16> to vector<16x16xbf16>
    %cst_153 = arith.constant dense<0.000000e+00> : vector<16x256xf32>
    %227 = tpu.matmul %226, %224, %cst_153 {dimension_numbers = #tpu.dot_dimension_numbers<[1], [0], [0], [1], [0, 0, 1, 1], [], []>} : vector<16x16xbf16>, vector<16x256xbf16>, vector<16x256xf32> -> vector<16x256xf32>
    %228 = arith.addf %215, %227 : vector<16x256xf32>
    %c0_154 = arith.constant 0 : index
    %c1_155 = arith.constant 1 : index
    %229 = vector.load %arg22[%c0_154, %c1_155] : memref<16x290xf32, #tpu.memory_space<vmem>>, vector<16x256xf32>
    %c1_156 = arith.constant 1 : index
    %c0_157 = arith.constant 0 : index
    %230 = vector.load %arg3[%c1_156, %c0_157] : memref<9x256xf32, #tpu.memory_space<vmem>>, vector<1x256xf32>
    %cst_158 = arith.constant 5.000000e-01 : f32
    %231 = vector.broadcast %cst_158 : f32 to vector<1x256xf32>
    %232 = arith.cmpf ogt, %230, %231 : vector<1x256xf32>
    %cst_159 = arith.constant 0.000000e+00 : f32
    %233 = vector.shape_cast %232 : vector<1x256xi1> to vector<1x256xi1>
    %234 = vector.broadcast %233 : vector<1x256xi1> to vector<16x256xi1>
    %235 = vector.broadcast %cst_159 : f32 to vector<16x256xf32>
    %236 = arith.select %234, %229, %235 : vector<16x256xi1>, vector<16x256xf32>
    %237 = arith.truncf %236 : vector<16x256xf32> to vector<16x256xbf16>
    %c0_160 = arith.constant 0 : index
    %c1_161 = arith.constant 1 : index
    %c0_162 = arith.constant 0 : index
    %c0_163 = arith.constant 0 : index
    %238 = vector.load %arg16[%c0_160, %c1_161, %c0_162, %c0_163] : memref<3x3x16x16xbf16, #tpu.memory_space<vmem>>, vector<1x1x16x16xbf16>
    %239 = vector.shape_cast %238 : vector<1x1x16x16xbf16> to vector<16x16xbf16>
    %cst_164 = arith.constant dense<0.000000e+00> : vector<16x256xf32>
    %240 = tpu.matmul %239, %237, %cst_164 {dimension_numbers = #tpu.dot_dimension_numbers<[1], [0], [0], [1], [0, 0, 1, 1], [], []>} : vector<16x16xbf16>, vector<16x256xbf16>, vector<16x256xf32> -> vector<16x256xf32>
    %241 = arith.addf %228, %240 : vector<16x256xf32>
    %c0_165 = arith.constant 0 : index
    %c2_166 = arith.constant 2 : index
    %242 = vector.load %arg22[%c0_165, %c2_166] : memref<16x290xf32, #tpu.memory_space<vmem>>, vector<16x256xf32>
    %c2_167 = arith.constant 2 : index
    %c0_168 = arith.constant 0 : index
    %243 = vector.load %arg3[%c2_167, %c0_168] : memref<9x256xf32, #tpu.memory_space<vmem>>, vector<1x256xf32>
    %cst_169 = arith.constant 5.000000e-01 : f32
    %244 = vector.broadcast %cst_169 : f32 to vector<1x256xf32>
    %245 = arith.cmpf ogt, %243, %244 : vector<1x256xf32>
    %cst_170 = arith.constant 0.000000e+00 : f32
    %246 = vector.shape_cast %245 : vector<1x256xi1> to vector<1x256xi1>
    %247 = vector.broadcast %246 : vector<1x256xi1> to vector<16x256xi1>
    %248 = vector.broadcast %cst_170 : f32 to vector<16x256xf32>
    %249 = arith.select %247, %242, %248 : vector<16x256xi1>, vector<16x256xf32>
    %250 = arith.truncf %249 : vector<16x256xf32> to vector<16x256xbf16>
    %c0_171 = arith.constant 0 : index
    %c2_172 = arith.constant 2 : index
    %c0_173 = arith.constant 0 : index
    %c0_174 = arith.constant 0 : index
    %251 = vector.load %arg16[%c0_171, %c2_172, %c0_173, %c0_174] : memref<3x3x16x16xbf16, #tpu.memory_space<vmem>>, vector<1x1x16x16xbf16>
    %252 = vector.shape_cast %251 : vector<1x1x16x16xbf16> to vector<16x16xbf16>
    %cst_175 = arith.constant dense<0.000000e+00> : vector<16x256xf32>
    %253 = tpu.matmul %252, %250, %cst_175 {dimension_numbers = #tpu.dot_dimension_numbers<[1], [0], [0], [1], [0, 0, 1, 1], [], []>} : vector<16x16xbf16>, vector<16x256xbf16>, vector<16x256xf32> -> vector<16x256xf32>
    %254 = arith.addf %241, %253 : vector<16x256xf32>
    %c0_176 = arith.constant 0 : index
    %c16_177 = arith.constant 16 : index
    %255 = vector.load %arg22[%c0_176, %c16_177] : memref<16x290xf32, #tpu.memory_space<vmem>>, vector<16x256xf32>
    %c3_178 = arith.constant 3 : index
    %c0_179 = arith.constant 0 : index
    %256 = vector.load %arg3[%c3_178, %c0_179] : memref<9x256xf32, #tpu.memory_space<vmem>>, vector<1x256xf32>
    %cst_180 = arith.constant 5.000000e-01 : f32
    %257 = vector.broadcast %cst_180 : f32 to vector<1x256xf32>
    %258 = arith.cmpf ogt, %256, %257 : vector<1x256xf32>
    %cst_181 = arith.constant 0.000000e+00 : f32
    %259 = vector.shape_cast %258 : vector<1x256xi1> to vector<1x256xi1>
    %260 = vector.broadcast %259 : vector<1x256xi1> to vector<16x256xi1>
    %261 = vector.broadcast %cst_181 : f32 to vector<16x256xf32>
    %262 = arith.select %260, %255, %261 : vector<16x256xi1>, vector<16x256xf32>
    %263 = arith.truncf %262 : vector<16x256xf32> to vector<16x256xbf16>
    %c1_182 = arith.constant 1 : index
    %c0_183 = arith.constant 0 : index
    %c0_184 = arith.constant 0 : index
    %c0_185 = arith.constant 0 : index
    %264 = vector.load %arg16[%c1_182, %c0_183, %c0_184, %c0_185] : memref<3x3x16x16xbf16, #tpu.memory_space<vmem>>, vector<1x1x16x16xbf16>
    %265 = vector.shape_cast %264 : vector<1x1x16x16xbf16> to vector<16x16xbf16>
    %cst_186 = arith.constant dense<0.000000e+00> : vector<16x256xf32>
    %266 = tpu.matmul %265, %263, %cst_186 {dimension_numbers = #tpu.dot_dimension_numbers<[1], [0], [0], [1], [0, 0, 1, 1], [], []>} : vector<16x16xbf16>, vector<16x256xbf16>, vector<16x256xf32> -> vector<16x256xf32>
    %267 = arith.addf %254, %266 : vector<16x256xf32>
    %c0_187 = arith.constant 0 : index
    %c17_188 = arith.constant 17 : index
    %268 = vector.load %arg22[%c0_187, %c17_188] : memref<16x290xf32, #tpu.memory_space<vmem>>, vector<16x256xf32>
    %c4_189 = arith.constant 4 : index
    %c0_190 = arith.constant 0 : index
    %269 = vector.load %arg3[%c4_189, %c0_190] : memref<9x256xf32, #tpu.memory_space<vmem>>, vector<1x256xf32>
    %cst_191 = arith.constant 5.000000e-01 : f32
    %270 = vector.broadcast %cst_191 : f32 to vector<1x256xf32>
    %271 = arith.cmpf ogt, %269, %270 : vector<1x256xf32>
    %cst_192 = arith.constant 0.000000e+00 : f32
    %272 = vector.shape_cast %271 : vector<1x256xi1> to vector<1x256xi1>
    %273 = vector.broadcast %272 : vector<1x256xi1> to vector<16x256xi1>
    %274 = vector.broadcast %cst_192 : f32 to vector<16x256xf32>
    %275 = arith.select %273, %268, %274 : vector<16x256xi1>, vector<16x256xf32>
    %276 = arith.truncf %275 : vector<16x256xf32> to vector<16x256xbf16>
    %c1_193 = arith.constant 1 : index
    %c1_194 = arith.constant 1 : index
    %c0_195 = arith.constant 0 : index
    %c0_196 = arith.constant 0 : index
    %277 = vector.load %arg16[%c1_193, %c1_194, %c0_195, %c0_196] : memref<3x3x16x16xbf16, #tpu.memory_space<vmem>>, vector<1x1x16x16xbf16>
    %278 = vector.shape_cast %277 : vector<1x1x16x16xbf16> to vector<16x16xbf16>
    %cst_197 = arith.constant dense<0.000000e+00> : vector<16x256xf32>
    %279 = tpu.matmul %278, %276, %cst_197 {dimension_numbers = #tpu.dot_dimension_numbers<[1], [0], [0], [1], [0, 0, 1, 1], [], []>} : vector<16x16xbf16>, vector<16x256xbf16>, vector<16x256xf32> -> vector<16x256xf32>
    %280 = arith.addf %267, %279 : vector<16x256xf32>
    %c0_198 = arith.constant 0 : index
    %c18_199 = arith.constant 18 : index
    %281 = vector.load %arg22[%c0_198, %c18_199] : memref<16x290xf32, #tpu.memory_space<vmem>>, vector<16x256xf32>
    %c5_200 = arith.constant 5 : index
    %c0_201 = arith.constant 0 : index
    %282 = vector.load %arg3[%c5_200, %c0_201] : memref<9x256xf32, #tpu.memory_space<vmem>>, vector<1x256xf32>
    %cst_202 = arith.constant 5.000000e-01 : f32
    %283 = vector.broadcast %cst_202 : f32 to vector<1x256xf32>
    %284 = arith.cmpf ogt, %282, %283 : vector<1x256xf32>
    %cst_203 = arith.constant 0.000000e+00 : f32
    %285 = vector.shape_cast %284 : vector<1x256xi1> to vector<1x256xi1>
    %286 = vector.broadcast %285 : vector<1x256xi1> to vector<16x256xi1>
    %287 = vector.broadcast %cst_203 : f32 to vector<16x256xf32>
    %288 = arith.select %286, %281, %287 : vector<16x256xi1>, vector<16x256xf32>
    %289 = arith.truncf %288 : vector<16x256xf32> to vector<16x256xbf16>
    %c1_204 = arith.constant 1 : index
    %c2_205 = arith.constant 2 : index
    %c0_206 = arith.constant 0 : index
    %c0_207 = arith.constant 0 : index
    %290 = vector.load %arg16[%c1_204, %c2_205, %c0_206, %c0_207] : memref<3x3x16x16xbf16, #tpu.memory_space<vmem>>, vector<1x1x16x16xbf16>
    %291 = vector.shape_cast %290 : vector<1x1x16x16xbf16> to vector<16x16xbf16>
    %cst_208 = arith.constant dense<0.000000e+00> : vector<16x256xf32>
    %292 = tpu.matmul %291, %289, %cst_208 {dimension_numbers = #tpu.dot_dimension_numbers<[1], [0], [0], [1], [0, 0, 1, 1], [], []>} : vector<16x16xbf16>, vector<16x256xbf16>, vector<16x256xf32> -> vector<16x256xf32>
    %293 = arith.addf %280, %292 : vector<16x256xf32>
    %c0_209 = arith.constant 0 : index
    %c32_210 = arith.constant 32 : index
    %294 = vector.load %arg22[%c0_209, %c32_210] : memref<16x290xf32, #tpu.memory_space<vmem>>, vector<16x256xf32>
    %c6_211 = arith.constant 6 : index
    %c0_212 = arith.constant 0 : index
    %295 = vector.load %arg3[%c6_211, %c0_212] : memref<9x256xf32, #tpu.memory_space<vmem>>, vector<1x256xf32>
    %cst_213 = arith.constant 5.000000e-01 : f32
    %296 = vector.broadcast %cst_213 : f32 to vector<1x256xf32>
    %297 = arith.cmpf ogt, %295, %296 : vector<1x256xf32>
    %cst_214 = arith.constant 0.000000e+00 : f32
    %298 = vector.shape_cast %297 : vector<1x256xi1> to vector<1x256xi1>
    %299 = vector.broadcast %298 : vector<1x256xi1> to vector<16x256xi1>
    %300 = vector.broadcast %cst_214 : f32 to vector<16x256xf32>
    %301 = arith.select %299, %294, %300 : vector<16x256xi1>, vector<16x256xf32>
    %302 = arith.truncf %301 : vector<16x256xf32> to vector<16x256xbf16>
    %c2_215 = arith.constant 2 : index
    %c0_216 = arith.constant 0 : index
    %c0_217 = arith.constant 0 : index
    %c0_218 = arith.constant 0 : index
    %303 = vector.load %arg16[%c2_215, %c0_216, %c0_217, %c0_218] : memref<3x3x16x16xbf16, #tpu.memory_space<vmem>>, vector<1x1x16x16xbf16>
    %304 = vector.shape_cast %303 : vector<1x1x16x16xbf16> to vector<16x16xbf16>
    %cst_219 = arith.constant dense<0.000000e+00> : vector<16x256xf32>
    %305 = tpu.matmul %304, %302, %cst_219 {dimension_numbers = #tpu.dot_dimension_numbers<[1], [0], [0], [1], [0, 0, 1, 1], [], []>} : vector<16x16xbf16>, vector<16x256xbf16>, vector<16x256xf32> -> vector<16x256xf32>
    %306 = arith.addf %293, %305 : vector<16x256xf32>
    %c0_220 = arith.constant 0 : index
    %c33_221 = arith.constant 33 : index
    %307 = vector.load %arg22[%c0_220, %c33_221] : memref<16x290xf32, #tpu.memory_space<vmem>>, vector<16x256xf32>
    %c7_222 = arith.constant 7 : index
    %c0_223 = arith.constant 0 : index
    %308 = vector.load %arg3[%c7_222, %c0_223] : memref<9x256xf32, #tpu.memory_space<vmem>>, vector<1x256xf32>
    %cst_224 = arith.constant 5.000000e-01 : f32
    %309 = vector.broadcast %cst_224 : f32 to vector<1x256xf32>
    %310 = arith.cmpf ogt, %308, %309 : vector<1x256xf32>
    %cst_225 = arith.constant 0.000000e+00 : f32
    %311 = vector.shape_cast %310 : vector<1x256xi1> to vector<1x256xi1>
    %312 = vector.broadcast %311 : vector<1x256xi1> to vector<16x256xi1>
    %313 = vector.broadcast %cst_225 : f32 to vector<16x256xf32>
    %314 = arith.select %312, %307, %313 : vector<16x256xi1>, vector<16x256xf32>
    %315 = arith.truncf %314 : vector<16x256xf32> to vector<16x256xbf16>
    %c2_226 = arith.constant 2 : index
    %c1_227 = arith.constant 1 : index
    %c0_228 = arith.constant 0 : index
    %c0_229 = arith.constant 0 : index
    %316 = vector.load %arg16[%c2_226, %c1_227, %c0_228, %c0_229] : memref<3x3x16x16xbf16, #tpu.memory_space<vmem>>, vector<1x1x16x16xbf16>
    %317 = vector.shape_cast %316 : vector<1x1x16x16xbf16> to vector<16x16xbf16>
    %cst_230 = arith.constant dense<0.000000e+00> : vector<16x256xf32>
    %318 = tpu.matmul %317, %315, %cst_230 {dimension_numbers = #tpu.dot_dimension_numbers<[1], [0], [0], [1], [0, 0, 1, 1], [], []>} : vector<16x16xbf16>, vector<16x256xbf16>, vector<16x256xf32> -> vector<16x256xf32>
    %319 = arith.addf %306, %318 : vector<16x256xf32>
    %c0_231 = arith.constant 0 : index
    %c34_232 = arith.constant 34 : index
    %320 = vector.load %arg22[%c0_231, %c34_232] : memref<16x290xf32, #tpu.memory_space<vmem>>, vector<16x256xf32>
    %c8_233 = arith.constant 8 : index
    %c0_234 = arith.constant 0 : index
    %321 = vector.load %arg3[%c8_233, %c0_234] : memref<9x256xf32, #tpu.memory_space<vmem>>, vector<1x256xf32>
    %cst_235 = arith.constant 5.000000e-01 : f32
    %322 = vector.broadcast %cst_235 : f32 to vector<1x256xf32>
    %323 = arith.cmpf ogt, %321, %322 : vector<1x256xf32>
    %cst_236 = arith.constant 0.000000e+00 : f32
    %324 = vector.shape_cast %323 : vector<1x256xi1> to vector<1x256xi1>
    %325 = vector.broadcast %324 : vector<1x256xi1> to vector<16x256xi1>
    %326 = vector.broadcast %cst_236 : f32 to vector<16x256xf32>
    %327 = arith.select %325, %320, %326 : vector<16x256xi1>, vector<16x256xf32>
    %328 = arith.truncf %327 : vector<16x256xf32> to vector<16x256xbf16>
    %c2_237 = arith.constant 2 : index
    %c2_238 = arith.constant 2 : index
    %c0_239 = arith.constant 0 : index
    %c0_240 = arith.constant 0 : index
    %329 = vector.load %arg16[%c2_237, %c2_238, %c0_239, %c0_240] : memref<3x3x16x16xbf16, #tpu.memory_space<vmem>>, vector<1x1x16x16xbf16>
    %330 = vector.shape_cast %329 : vector<1x1x16x16xbf16> to vector<16x16xbf16>
    %cst_241 = arith.constant dense<0.000000e+00> : vector<16x256xf32>
    %331 = tpu.matmul %330, %328, %cst_241 {dimension_numbers = #tpu.dot_dimension_numbers<[1], [0], [0], [1], [0, 0, 1, 1], [], []>} : vector<16x16xbf16>, vector<16x256xbf16>, vector<16x256xf32> -> vector<16x256xf32>
    %332 = arith.addf %319, %331 : vector<16x256xf32>
    %c0_242 = arith.constant 0 : index
    %c0_243 = arith.constant 0 : index
    %333 = vector.load %arg17[%c0_242, %c0_243] : memref<16x1xf32, #tpu.memory_space<vmem>>, vector<16x1xf32>
    %334 = vector.broadcast %333 : vector<16x1xf32> to vector<16x256xf32>
    %335 = arith.addf %332, %334 : vector<16x256xf32>
    %c0_244 = arith.constant 0 : index
    %c0_245 = arith.constant 0 : index
    %336 = vector.load %arg18[%c0_244, %c0_245] : memref<16x8xbf16, #tpu.memory_space<vmem>>, vector<16x8xbf16>
    %337 = arith.truncf %5 : vector<8x256xf32> to vector<8x256xbf16>
    %cst_246 = arith.constant dense<0.000000e+00> : vector<16x256xf32>
    %338 = tpu.matmul %336, %337, %cst_246 {dimension_numbers = #tpu.dot_dimension_numbers<[1], [0], [0], [1], [0, 0, 1, 1], [], []>} : vector<16x8xbf16>, vector<8x256xbf16>, vector<16x256xf32> -> vector<16x256xf32>
    %339 = arith.addf %335, %338 : vector<16x256xf32>
    %c0_247 = arith.constant 0 : index
    %c0_248 = arith.constant 0 : index
    %340 = vector.load %arg19[%c0_247, %c0_248] : memref<16x1xf32, #tpu.memory_space<vmem>>, vector<16x1xf32>
    %341 = vector.broadcast %340 : vector<16x1xf32> to vector<16x256xf32>
    %342 = arith.addf %339, %341 : vector<16x256xf32>
    %c0_249 = arith.constant 0 : index
    %c0_250 = arith.constant 0 : index
    %c0_251 = arith.constant 0 : index
    %343 = vector.load %arg20[%c0_249, %c0_250, %c0_251] : memref<1x16x256xf32, #tpu.memory_space<vmem>>, vector<1x16x256xf32>
    %344 = vector.shape_cast %343 : vector<1x16x256xf32> to vector<16x256xf32>
    %345 = vector.shape_cast %342 : vector<16x256xf32> to vector<1x16x256xf32>
    tpu.vector_store %arg20[%c0_249, %c0_250, %c0_251], %345 {strides = array<i32>} : memref<1x16x256xf32, #tpu.memory_space<vmem>>, vector<1x16x256xf32>,
    return
  }
  func.func @transform_0(%arg0: i32) -> (i32, i32, i32) {
    %c0_i32 = arith.constant 0 : i32
    %c0_i32_0 = arith.constant 0 : i32
    %c0_i32_1 = arith.constant 0 : i32
    return %arg0, %c0_i32, %c0_i32_0 : i32, i32, i32
  }
  func.func @transform_1(%arg0: i32) -> (i32, i32, i32) {
    %c0_i32 = arith.constant 0 : i32
    %c0_i32_0 = arith.constant 0 : i32
    %c0_i32_1 = arith.constant 0 : i32
    return %arg0, %c0_i32, %c0_i32_0 : i32, i32, i32
  }
  func.func @transform_2(%arg0: i32) -> (i32, i32) {
    %c0_i32 = arith.constant 0 : i32
    %c0_i32_0 = arith.constant 0 : i32
    %c0_i32_1 = arith.constant 0 : i32
    return %c0_i32, %c0_i32_0 : i32, i32
  }
  func.func @transform_3(%arg0: i32) -> (i32, i32) {
    %c0_i32 = arith.constant 0 : i32
    %c0_i32_0 = arith.constant 0 : i32
    %c0_i32_1 = arith.constant 0 : i32
    return %c0_i32, %c0_i32_0 : i32, i32
  }
  func.func @transform_4(%arg0: i32) -> (i32, i32) {
    %c0_i32 = arith.constant 0 : i32
    %c0_i32_0 = arith.constant 0 : i32
    %c0_i32_1 = arith.constant 0 : i32
    return %c0_i32, %c0_i32_0 : i32, i32
  }
  func.func @transform_5(%arg0: i32) -> (i32, i32) {
    %c0_i32 = arith.constant 0 : i32
    %c0_i32_0 = arith.constant 0 : i32
    %c0_i32_1 = arith.constant 0 : i32
    return %c0_i32, %c0_i32_0 : i32, i32
  }
  func.func @transform_6(%arg0: i32) -> (i32, i32) {
    %c0_i32 = arith.constant 0 : i32
    %c0_i32_0 = arith.constant 0 : i32
    %c0_i32_1 = arith.constant 0 : i32
    return %c0_i32, %c0_i32_0 : i32, i32
  }
  func.func @transform_7(%arg0: i32) -> (i32, i32) {
    %c0_i32 = arith.constant 0 : i32
    %c0_i32_0 = arith.constant 0 : i32
    %c0_i32_1 = arith.constant 0 : i32
    return %c0_i32, %c0_i32_0 : i32, i32
  }
  func.func @transform_8(%arg0: i32) -> (i32, i32) {
    %c0_i32 = arith.constant 0 : i32
    %c0_i32_0 = arith.constant 0 : i32
    %c0_i32_1 = arith.constant 0 : i32
    return %c0_i32, %c0_i32_0 : i32, i32
  }
  func.func @transform_9(%arg0: i32) -> (i32, i32) {
    %c0_i32 = arith.constant 0 : i32
    %c0_i32_0 = arith.constant 0 : i32
    %c0_i32_1 = arith.constant 0 : i32
    return %c0_i32, %c0_i32_0 : i32, i32
  }
  func.func @transform_10(%arg0: i32) -> (i32, i32, i32, i32) {
    %c0_i32 = arith.constant 0 : i32
    %c0_i32_0 = arith.constant 0 : i32
    %c0_i32_1 = arith.constant 0 : i32
    %c0_i32_2 = arith.constant 0 : i32
    %c0_i32_3 = arith.constant 0 : i32
    return %c0_i32, %c0_i32_0, %c0_i32_1, %c0_i32_2 : i32, i32, i32, i32
  }
  func.func @transform_11(%arg0: i32) -> (i32, i32) {
    %c0_i32 = arith.constant 0 : i32
    %c0_i32_0 = arith.constant 0 : i32
    %c0_i32_1 = arith.constant 0 : i32
    return %c0_i32, %c0_i32_0 : i32, i32
  }
  func.func @transform_12(%arg0: i32) -> (i32, i32) {
    %c0_i32 = arith.constant 0 : i32
    %c0_i32_0 = arith.constant 0 : i32
    %c0_i32_1 = arith.constant 0 : i32
    return %c0_i32, %c0_i32_0 : i32, i32
  }
  func.func @transform_13(%arg0: i32) -> (i32, i32) {
    %c0_i32 = arith.constant 0 : i32
    %c0_i32_0 = arith.constant 0 : i32
    %c0_i32_1 = arith.constant 0 : i32
    return %c0_i32, %c0_i32_0 : i32, i32
  }
  func.func @transform_14(%arg0: i32) -> (i32, i32) {
    %c0_i32 = arith.constant 0 : i32
    %c0_i32_0 = arith.constant 0 : i32
    %c0_i32_1 = arith.constant 0 : i32
    return %c0_i32, %c0_i32_0 : i32, i32
  }
  func.func @transform_15(%arg0: i32) -> (i32, i32, i32, i32) {
    %c0_i32 = arith.constant 0 : i32
    %c0_i32_0 = arith.constant 0 : i32
    %c0_i32_1 = arith.constant 0 : i32
    %c0_i32_2 = arith.constant 0 : i32
    %c0_i32_3 = arith.constant 0 : i32
    return %c0_i32, %c0_i32_0, %c0_i32_1, %c0_i32_2 : i32, i32, i32, i32
  }
  func.func @transform_16(%arg0: i32) -> (i32, i32) {
    %c0_i32 = arith.constant 0 : i32
    %c0_i32_0 = arith.constant 0 : i32
    %c0_i32_1 = arith.constant 0 : i32
    return %c0_i32, %c0_i32_0 : i32, i32
  }
  func.func @transform_17(%arg0: i32) -> (i32, i32) {
    %c0_i32 = arith.constant 0 : i32
    %c0_i32_0 = arith.constant 0 : i32
    %c0_i32_1 = arith.constant 0 : i32
    return %c0_i32, %c0_i32_0 : i32, i32
  }
  func.func @transform_18(%arg0: i32) -> (i32, i32) {
    %c0_i32 = arith.constant 0 : i32
    %c0_i32_0 = arith.constant 0 : i32
    %c0_i32_1 = arith.constant 0 : i32
    return %c0_i32, %c0_i32_0 : i32, i32
  }
  func.func @transform_19(%arg0: i32) -> (i32, i32, i32) {
    %c0_i32 = arith.constant 0 : i32
    %c0_i32_0 = arith.constant 0 : i32
    %c0_i32_1 = arith.constant 0 : i32
    return %arg0, %c0_i32, %c0_i32_0 : i32, i32, i32
  }
}

</mosaic_0001>

<bundles_post_ra>
// kernel: _lambda_.1
= control target key start
LH: loop header
LB: loop body
LE: loop exit
PB: predicated region body
PF: predicated region fallthrough
CT: control target
= control target key end

     0   :  { %s4473_s0 = inlined_call_operand.vmem [shape: f32[2,8,256], index: 0, kind: input, shape index: {}]   ;;  %s4474_s1 = inlined_call_operand.vmem [shape: f32[2,32,1], index: 1, kind: input, shape index: {}]   ;;  %s4475_s2 = inlined_call_operand.vmem [shape: f32[9,256], index: 2, kind: input, shape index: {}]   ;;  %s4476_s3 = inlined_call_operand.vmem [shape: f32[8,1], index: 3, kind: input, shape index: {}]   ;;  %s4477_s4 = inlined_call_operand.vmem [shape: f32[8,1], index: 4, kind: input, shape index: {}]   ;;  %s4478_s5 = inlined_call_operand.vmem [shape: f32[8,8], index: 5, kind: input, shape index: {}]   ;;  %s4479_s6 = inlined_call_operand.vmem [shape: f32[16,32], index: 6, kind: input, shape index: {}]   ;;  %s4480_s7 = inlined_call_operand.vmem [shape: f32[16,1], index: 7, kind: input, shape index: {}]   ;;  %s4481_s8 = inlined_call_operand.vmem [shape: f32[16,32], index: 8, kind: input, shape index: {}]   ;;  %s4482_s9 = inlined_call_operand.vmem [shape: f32[16,1], index: 9, kind: input, shape index: {}]   ;;  %s4483_s10 = inlined_call_operand.vmem [shape: bf16[3,3,16,8], index: 10, kind: input, shape index: {}]   ;;  %s4484_s11 = inlined_call_operand.vmem [shape: f32[16,1], index: 11, kind: input, shape index: {}]   ;;  %s4485_s12 = inlined_call_operand.vmem [shape: f32[16,1], index: 12, kind: input, shape index: {}]   ;;  %s4486_s13 = inlined_call_operand.vmem [shape: f32[16,1], index: 13, kind: input, shape index: {}]   ;;  %s4487_s14 = inlined_call_operand.vmem [shape: f32[16,16], index: 14, kind: input, shape index: {}]   ;;  %s4488_s15 = inlined_call_operand.vmem [shape: bf16[3,3,16,16], index: 15, kind: input, shape index: {}]   ;;  %s4489_s16 = inlined_call_operand.vmem [shape: f32[16,1], index: 16, kind: input, shape index: {}]   ;;  %s4490_s17 = inlined_call_operand.vmem [shape: bf16[16,8], index: 17, kind: input, shape index: {}]   ;;  %s4491_s18 = inlined_call_operand.vmem [shape: f32[16,1], index: 18, kind: input, shape index: {}]   ;;  %s4492_s19 = inlined_call_operand.vmem [shape: f32[2,16,256], index: 19, kind: output, shape index: {}]  }
   0x1   :  { %4512 = sst [smem:[#allocation4_spill]] %s4473_s0  ;;  %s3907_s0 = smov 0  }
   0x2   :  { %4513 = sst [smem:[#allocation5_spill]] %s4474_s1 }
   0x3   :  { %4514 = sst [smem:[#allocation6_spill]] %s4475_s2 }
   0x4   :  { %4515 = sst [smem:[#allocation7_spill]] %s4476_s3 }
   0x5 LB: > { %s3247_s30 = sadd.s32 4294967295, %s3794_s0   ;;  %p3251_p0 = scmp.ge.s32.totalorder %s3794_s0, 1  ;;  %s3794_s0 = sphi %s3907_s0, %s29_s0  }
   0x6   : > { %p547_p1 = scmp.lt.s32.totalorder %s3794_s0, 3 }
   0x8   : > { %p548_p2 = pnand %p3251_p0, %p547_p1 }
   0x9   : > { %p608_p3 = scmp.lt.s32.totalorder (!%p548_p2), %s3247_s30, 1  ;;  %v3796_v0 = vmov (!%p548_p2), 0.0   ;;  %v636_v1 = vld [vmem:[%s4478_s5] sm:$0xff] (!%p548_p2)  ;;  %s4516_s23 = sld [smem:[#allocation4_spill]] (!%p548_p2)  ;;  %vm4511_vm0 = vcmask (!%p548_p2), 64512   ;;  %v3797_v14 = vmov (!%p548_p2), 0  }
   0xa   : > { %551 = sbr.rel (%p548_p2) target bundleno = 2731 (0xaab), region = 96  ;;  %707 = vmatprep.mubr.f32.mxu0 (!%p548_p2), %v3796_v0  ;;  %624 = vst [vmem:[#allocation2] sm:$0xff] (!%p548_p2), %v3796_v0  ;;  %628 = vst [vmem:[#allocation3] sm:$0xff] (!%p548_p2), %v3796_v0  ;;  %786 = vmatprep.mubr.f32.mxu1 (!%p548_p2), %v3796_v0  ;;  %s4517_s26 = sld [smem:[#allocation7_spill]] (!%p548_p2)  ;;  %v638_v15 = vld [vmem:[%s4477_s4] sm:$0xff] (!%p548_p2)  ;;  %vm626_vm1 = vcmask (!%p548_p2), 277504  }
   0xb   : > { %631 = vst [vmem:[#allocation3 + $0x18] sm:$0xff] (!%p548_p2), %v3796_v0  ;;  %3548 = vset.pattern.permute.xlu1 (!%p548_p2), %v3797_v14  ;;  %3599 = vset.pattern.permute.xlu0 (!%p548_p2), %v3797_v14  ;;  %627 = vst.msk [vmem:[#allocation2 + $0x10] sm:$0xff] (!%p548_p2), %vm626_vm1, %v3796_v0  ;;  %s4518_s1 = sld [smem:[#allocation5_spill]] (!%p548_p2)  ;;  %s3798_s2 = smov (!%p548_p2), 17   ;;  %vm840_vm2 = vcmask (!%p548_p2), 1047688   ;;  %vm835_vm3 = vcmask (!%p548_p2), 138240  }
   0xc   : > { %630 = vst.msk [vmem:[#allocation3 + $0x10] sm:$0xff] (!%p548_p2), %vm626_vm1, %v3796_v0  ;;  %633 = vst.msk [vmem:[#allocation3 + $0x28] sm:$0xff] (!%p548_p2), %vm626_vm1, %v3796_v0  ;;  %s4509_s25 = smov (!%p548_p2), 127   ;;  %s4503_s3 = smov (!%p548_p2), 112   ;;  %vm910_vm4 = vcmask (!%p548_p2), 261120   ;;  %vm1136_vm8 = vcmask (!%p548_p2), 1039360  }
   0xd   : > { %s4499_s27 = smov (!%p548_p2), 110   ;;  %s4497_s28 = smov (!%p548_p2), 96   ;;  %vm1283_vm14 = vcmask (!%p548_p2), 1031168   ;;  %vm1156_vm15 = vcmask (!%p548_p2), 1043456  }
   0xe   : > { %s4528_s21 = smov (!%p548_p2), 95  }
  0x10   : > { %v637_v13 = vld [vmem:[%s4517_s26] sm:$0xff] (!%p548_p2)  ;;  %s4495_s26 = smov (!%p548_p2), 111  }
  0x11   : > { %s4553_s30 = smov (!%p608_p3, %s3247_s30), 1  ;;  %803 = vperm.xlu1 %3548, %v637_v13  }
  0x12   : > { %s3430_s20 = sshll.u32 %s4553_s30, 4  ;;  %s4494_s29 = sshll.u32 %s4553_s30, 5 }
  0x13   : > { %s3929_s24 = scalar_lea.vmem %s4516_s23, %s3430_s20  ;;  %s617_s22 = scalar_lea.vmem %s4518_s1, %s4494_s29 }
  0x14   : > { %v635_v2 = vld [vmem:[%s3929_s24 + $0x8] sm:$0xff]  ;;  %v634_v3 = vld [vmem:[%s3929_s24] sm:$0xff]  ;;  %v846_v24 = vld [vmem:[%s617_s22 + $0x10] sm:$0xff]  ;;  %s4507_s23 = smov 126   ;;  %s4501_s1 = smov 95  }
  0x15   : > { %643 = vmatprep.subr.mxu0 %v635_v2  ;;  %810 = vperm.xlu1 %3548, %v638_v15   ;;  %v844_v22 = vld [vmem:[%s617_s22] sm:$0xff]  ;;  %v845_v23 = vld [vmem:[%s617_s22 + $0x8] sm:$0xff]  ;;  %v847_v26 = vld [vmem:[%s617_s22 + $0x18] sm:$0xff]  ;;  %v3264_v29 = vmul.f32 -1.442695, %v846_v24  ;;  %s4523_s22 = smov 126  }
  0x16   : > { %644 = vmatpush1.msra.mxu0 %v634_v3  ;;  %v3262_v25 = vmul.f32 -1.442695, %v844_v22  ;;  %v3263_v28 = vmul.f32 -1.442695, %v845_v23  ;;  %v3265_v31 = vmul.f32 -1.442695, %v847_v26 }
  0x17   : > { %3258 = vmatmul.mubr.msk.f32.vlgmr.msra.gmra.mrb[0].mxu0 %vm4511_vm0, %v636_v1  ;;  %s4526_s20 = smov 110  }
  0x18   : > { %981 = vmatprep.mubr.f32.mxu0 %v3796_v0 }
  0x90   : > { %v804_v27 = vpop.permute.xlu1 %803 }
  0x94   : > { %v811_v36 = vpop.permute.xlu1 %810 }
  0xea   : > { %v709_v4 = vpop.f32.mrb[0].mxu0 }
  0xeb   : > { %v711_v5 = vpop.f32.mrb[1].mxu0 }
  0xec   : > { %v714_v6 = vadd.f32 %v711_v5, %v709_v4 }
  0xee   : > { %715 = vadd.xlane.f32.xlu0 %v714_v6 }
 0x17b   : > { %v716_v7 = vpop.xlane.xlu0 %715 }
 0x17c   : > { %v717_v8 = vmul.f32 0.00390625, %v716_v7 }
 0x17e   : > { %v718_v9 = vsub.f32 %v634_v3, %v717_v8  ;;  %v719_v10 = vsub.f32 %v635_v2, %v717_v8 }
 0x180   : > { %v721_v11 = vmul.f32 %v719_v10, %v719_v10  ;;  %v720_v12 = vmul.f32 %v718_v9, %v718_v9 }
 0x182   : > { %722 = vmatprep.subr.mxu1 %v721_v11 }
 0x183   : > { %723 = vmatpush1.msra.mxu1 %v720_v12 }
 0x184   : > { %3259 = vmatmul.mubr.msk.f32.vlgmr.msra.gmra.mrb[0].mxu1 %vm4511_vm0, %v636_v1 }
 0x185   : > { %2019 = vmatprep.mubr.f32.mxu1 %v3796_v0 }
 0x257   : > { %v788_v16 = vpop.f32.mrb[0].mxu1 }
 0x258   : > { %v790_v17 = vpop.f32.mrb[1].mxu1 }
 0x259   : > { %v793_v18 = vadd.f32 %v790_v17, %v788_v16 }
 0x25b   : > { %794 = vadd.xlane.f32.xlu0 %v793_v18 }
 0x2e8   : > { %v795_v19 = vpop.xlane.xlu0 %794 }
 0x2e9   : > { %v796_v20 = vmul.f32 0.00390625, %v795_v19  ;;  %v896_v19 = vld [vmem:[%s4479_s6] sm:$0xff] }
 0x2eb   : > { %v797_v21 = vadd.f32 1e-05, %v796_v20  ;;  %v897_v20 = vld [vmem:[%s4479_s6 + $0x8] sm:$0xff] }
 0x2ed   : > { %3739 = vrsqrt.f32 %v797_v21  ;;  %v994_v21 = vld [vmem:[%s4481_s8] sm:$0xff] }
 0x2ee   : > { %3741 = vpow2.f32 %v3262_v25  ;;  %v1915_v25 = vld [vmem:[%s4484_s11 + $0x8] sm:$0xff] }
 0x2ef   : > { %3743 = vpow2.f32 %v3263_v28  ;;  %v996_v28 = vld [vmem:[%s4482_s9] sm:$0xff] }
 0x2f0   : > { %3745 = vpow2.f32 %v3264_v29  ;;  %v1096_v29 = vlaneseq }
 0x2f1   : > { %3747 = vpow2.f32 %v3265_v31 }
 0x2f7   : > { %v3740_v30 = vpop.eup %3739 }
 0x2f8   : > { %v799_v32 = vmul.f32 %v3740_v30, %v718_v9  ;;  %v800_v33 = vmul.f32 %v3740_v30, %v719_v10  ;;  %v3742_v41 = vpop.eup %3741 }
 0x2f9   : > { %v3744_v42 = vpop.eup %3743  ;;  %v860_v45 = vadd.f32 1.0, %v3742_v41 }
 0x2fa   : > { %v806_v34 = vmul.f32 %v804_v27, %v799_v32  ;;  %v807_v35 = vmul.f32 %v804_v27, %v800_v33  ;;  %v3746_v43 = vpop.eup %3745  ;;  %v861_v46 = vadd.f32 1.0, %v3744_v42  ;;  %v899_v27 = vld [vmem:[%s4480_s7 + $0x8] sm:$0xff]  ;;  %v1097_v32 = vshrl.u32 %v1096_v29, 7 }
 0x2fb   : > { %v3748_v44 = vpop.eup %3747  ;;  %v862_v47 = vadd.f32 1.0, %v3746_v43 }
 0x2fc   : > { %v813_v37 = vadd.f32 %v811_v36, %v806_v34  ;;  %v814_v38 = vadd.f32 %v811_v36, %v807_v35  ;;  %v863_v48 = vadd.f32 1.0, %v3748_v44  ;;  %v4025_v33 = vsub.s32 1, %v1097_v32 }
 0x2fd   : > { %v4028_v35 = vsub.s32 0, %v1097_v32 }
 0x2fe   : > { %v3260_v39 = vmul.f32 -1.442695, %v813_v37  ;;  %v3261_v40 = vmul.f32 -1.442695, %v814_v38 }
 0x300   : > { %3749 = vpow2.f32 %v3260_v39 }
 0x301   : > { %3751 = vpow2.f32 %v3261_v40 }
 0x302   : > { %3753 = vrcp.f32 %v860_v45 }
 0x303   : > { %3755 = vrcp.f32 %v861_v46 }
 0x304   : > { %3757 = vrcp.f32 %v862_v47 }
 0x305   : > { %3759 = vrcp.f32 %v863_v48 }
 0x30a   : > { %v3750_v49 = vpop.eup %3749 }
 0x30b   : > { %v3752_v50 = vpop.eup %3751  ;;  %v821_v51 = vadd.f32 1.0, %v3750_v49 }
 0x30c   : > { %v822_v52 = vadd.f32 1.0, %v3752_v50  ;;  %v3754_v53 = vpop.eup %3753 }
 0x30d   : > { %3761 = vrcp.f32 %v821_v51  ;;  %v3756_v54 = vpop.eup %3755  ;;  %v872_v58 = vmul.f32 %v3754_v53, %v844_v22  ;;  %v995_v22 = vld [vmem:[%s4481_s8 + $0x8] sm:$0xff] }
 0x30e   : > { %3763 = vrcp.f32 %v822_v52  ;;  %v3758_v55 = vpop.eup %3757  ;;  %v873_v59 = vmul.f32 %v3756_v54, %v845_v23  ;;  %v898_v23 = vld [vmem:[%s4480_s7] sm:$0xff] }
 0x30f   : > { %v3760_v56 = vpop.eup %3759  ;;  %v874_v1 = vmul.f32 %v3758_v55, %v846_v24  ;;  %v1914_v24 = vld [vmem:[%s4484_s11] sm:$0xff] }
 0x310   : > { %v3549_v63 = vpack.i.bf16 %v873_v59, %v872_v58  ;;  %v875_v2 = vmul.f32 %v3760_v56, %v847_v26  ;;  %v997_v26 = vld [vmem:[%s4482_s9 + $0x8] sm:$0xff] }
 0x312   : > { %v3554_v3 = vpack.i.bf16 %v875_v2, %v874_v1 }
 0x317   : > { %v3762_v57 = vpop.eup %3761 }
 0x318   : > { %v3764_v60 = vpop.eup %3763  ;;  %v827_v61 = vmul.f32 %v3762_v57, %v813_v37 }
 0x319   : > { %v828_v62 = vmul.f32 %v3764_v60, %v814_v38 }
 0x31a   : > { %831 = vrot.lane.b32.xlu0 %v827_v61, %s3798_s2 }
 0x31b   : > { %833 = vrot.lane.b32.xlu1 %v828_v62, %s3798_s2  ;;  %v3720_v62 = vld [vmem:[%s4483_s10 + $0x8] sm:$0xff]  }
 0x31f   : > { %3550 = vperm.xlu1 %3548, %v3549_v63  }
 0x323   : > { %3555 = vperm.xlu1 %3548, %v3554_v3  }
 0x38c   : > { %v832_v4 = vpop.permute.xlu0 %831 }
 0x38d   : > { %v834_v5 = vpop.permute.xlu1 %833  ;;  %841 = vst.msk [vmem:[#allocation2] sm:$0xff] %vm840_vm2, %v832_v4 }
 0x38e   : > { %843 = vst.msk [vmem:[#allocation2 + $0x10] sm:$0xff] %vm835_vm3, %v834_v5  ;;  %v3959_v6 = vsel %vm835_vm3, %v832_v4, %v834_v5 }
 0x394   : > { %v3961_v7 = vld [vmem:[#allocation2] sm:$0xff] }
 0x395   : > { %v1112_v8 = vld [vmem:[#allocation2 + $0x10] sm:$0xff]  ;;  %v3559_v9 = vpack.i.bf16 %v3959_v6, %v3961_v7 }
 0x396   : > { %1281 = vrot.lane.b32.xlu0 %v1112_v8, %s4507_s23 }
 0x397   : > { %3560 = vrot.lane.b32.xlu1 %v3559_v9, %s4509_s25 }
 0x39a   : > { %1374 = vrot.lane.b32.xlu0 %v1112_v8, %s4503_s3 }
 0x39b   : > { %1134 = vrot.lane.b32.xlu1 %v1112_v8, %s4509_s25 }
 0x39e   : > { %v3551_v10 = vpop.permute.xlu1 %3550  ;;  %1467 = vrot.lane.b32.xlu0 %v1112_v8, %s4495_s26 }
 0x39f   : > { %v3553_v11 = vunpack.i.h.bf16 %v3551_v10  ;;  %v3552_v12 = vunpack.i.l.bf16 %v3551_v10  ;;  %3565 = vrot.lane.b32.xlu1 %v3559_v9, %s4507_s23  ;;  %s4529_s23 = smov 94  }
 0x3a1   : > { %v3433_v13 = vpack.c.bf16 %v3553_v11, %v3552_v12 }
 0x3a2   : > { %v3556_v15 = vpop.permute.xlu1 %3555  ;;  %1560 = vrot.lane.b32.xlu0 %v1112_v8, %s4499_s27 }
 0x3a3   : > { %v3558_v16 = vunpack.i.h.bf16 %v3556_v15  ;;  %v3557_v17 = vunpack.i.l.bf16 %v3556_v15  ;;  %3434 = vmatprep.subr.bf16.mxu0 %v3433_v13  ;;  %3570 = vrot.lane.b32.xlu1 %v3559_v9, %s4503_s3  ;;  %s4527_s3 = smov 96  }
 0x3a4   : > { %3436 = vmatpush1.bf16.msra.mxu0 %v3433_v13 }
 0x3a5   : > { %v3437_v18 = vpack.c.bf16 %v3558_v16, %v3557_v17 }
 0x3a6   : > { %1653 = vrot.lane.b32.xlu0 %v1112_v8, %s4497_s28 }
 0x3a7   : > { %3438 = vmatprep.subr.bf16.mxu0 %v3437_v18  ;;  %3575 = vrot.lane.b32.xlu1 %v3559_v9, %s4495_s26  ;;  %s4505_s26 = smov 94  }
 0x3a8   : > { %3440 = vmatpush1.bf16.msra.mxu0 %v3437_v18 }
 0x3a9   : > { %3442 = vmatprep.subr.bf16.mxu0 %v3433_v13 }
 0x3aa   : > { %1746 = vrot.lane.b32.xlu0 %v1112_v8, %s4501_s1 }
 0x3ab   : > { %3266 = vmatmul.mubr.msk.f32.vlgmr.msra.gmra.mrb[2].mxu0 %vm910_vm4, %v896_v19  ;;  %3580 = vrot.lane.b32.xlu1 %v3559_v9, %s4499_s27  ;;  %s4524_s27 = smov 112  }
 0x3ac   : > { %3444 = vmatpush1.bf16.msra.mxu0 %v3433_v13  ;;  %987 = vmatprep.mubr.f32.mxu0 %v3796_v0 }
 0x3ad   : > { %3446 = vmatprep.subr.bf16.mxu0 %v3437_v18 }
 0x3ae   : > { %1839 = vrot.lane.b32.xlu0 %v1112_v8, %s4505_s26 }
 0x3af   : > { %3267 = vmatmul.mubr.msk.f32.gmra.mrb[4].mxu0 %vm910_vm4, %v897_v20  ;;  %3585 = vrot.lane.b32.xlu1 %v3559_v9, %s4497_s28  ;;  %s4525_s28 = smov 111  }
 0x3b0   : > { %3448 = vmatpush1.bf16.msra.mxu0 %v3437_v18  ;;  %1078 = vmatprep.mubr.f32.mxu0 %v3796_v0  ;;  %v3721_v18 = vld [vmem:[%s4483_s10] sm:$0xff]  }
 0x3b2   : > { %907 = vperm.xlu0 %3599, %v899_v27  }
 0x3b3   : > { %3268 = vmatmul.mubr.msk.f32.vlgmr.msra.gmra.mrb[6].mxu0 %vm910_vm4, %v994_v21  ;;  %3590 = vrot.lane.b32.xlu1 %v3559_v9, %s4501_s1  ;;  %s4519_s1 = sld [smem:[#allocation6_spill]] }
 0x3b4   : > { %1084 = vmatprep.mubr.f32.mxu0 %v3796_v0 }
 0x3b6   : > { %1000 = vperm.xlu0 %3599, %v996_v28  }
 0x3b7   : > { %3269 = vmatmul.mubr.msk.f32.gmra.mrb[8].mxu0 %vm910_vm4, %v995_v22  ;;  %3595 = vrot.lane.b32.xlu1 %v3559_v9, %s4505_s26 }
 0x3b8   : > { %1195 = vmatprep.mubr.bf16.mxu0 %v3797_v14 }
 0x3b9   : > { %v3270_v30 = vld [vmem:[%s4519_s1 + $0x1] ss:$8 sm:$0x3]  ;;  %v1093_v31 = vld [vmem:[%s4519_s1] ss:$8 sm:$0x3] }
 0x3ba   : > { %vm1115_vm5 = vcmp.gt.f32.partialorder %v3270_v30, 0.5  ;;  %vm1094_vm6 = vcmp.gt.f32.partialorder %v1093_v31, 0.5  ;;  %v3279_v36 = vld [vmem:[%s4519_s1 + $0x2] ss:$8 sm:$0x3] }
 0x3bb   : > { %902 = vperm.xlu1 %3548, %v898_v23   ;;  %v1116_v34 = vsel %vm1115_vm5, 1, %v3797_v14  ;;  %v1095_v37 = vsel %vm1094_vm6, 1, %v3797_v14  ;;  %vm1265_vm7 = vcmp.gt.f32.partialorder %v3279_v36, 0.5  ;;  %v3285_v54 = vld [vmem:[%s4519_s1 + $0x3] ss:$8 sm:$0x3] }
 0x3bc   : > { %v1120_v38 = vrot.slane %v1116_v34, %v4028_v35  ;;  %v1103_v39 = vrot.slane %v1095_v37, %v4025_v33  ;;  %v1124_v40 = vrot.slane %v1116_v34, %v4025_v33  ;;  %v1099_v41 = vrot.slane %v1095_v37, %v4028_v35  ;;  %v3291_v15 = vld [vmem:[%s4519_s1 + $0x4] ss:$8 sm:$0x3]  ;;  %v3297_v31 = vld [vmem:[%s4519_s1 + $0x5] ss:$8 sm:$0x3] }
 0x3bd   : > { %v1266_v45 = vsel %vm1265_vm7, 1, %v3797_v14  ;;  %vm1358_vm1 = vcmp.gt.f32.partialorder %v3285_v54, 0.5  ;;  %vm1376_vm5 = vcmask 916480   ;;  %vm1451_vm7 = vcmp.gt.f32.partialorder %v3291_v15, 0.5  ;;  %v3722_v36 = vld [vmem:[%s4483_s10 + $0x10] sm:$0xff]  }
 0x3be   : > { %vm1125_vm9 = vcmp.eq.s32.totalorder %v1120_v38, 1  ;;  %vm1105_vm10 = vcmp.eq.s32.totalorder %v1103_v39, 1  ;;  %vm1126_vm11 = vcmp.eq.s32.totalorder %v1124_v40, 1  ;;  %vm1104_vm12 = vcmp.eq.s32.totalorder %v1099_v41, 1 }
 0x3bf   : > { %1918 = vperm.xlu1 %3548, %v1914_v24   ;;  %v1274_v48 = vrot.slane %v1266_v45, %v4025_v33  ;;  %v1107_v52 = vsel %vm1105_vm10, %v3959_v6, 0.0  ;;  %v1106_v55 = vsel %vm1104_vm12, %v3961_v7, 0.0  ;;  %v1270_v4 = vrot.slane %v1266_v45, %v4028_v35 }
 0x3c0   : > { %v1109_v59 = vpack.c.bf16 %v1107_v52, %v1107_v52  ;;  %v1108_v63 = vpack.c.bf16 %v1106_v55, %v1106_v55  ;;  %v1359_v6 = vsel %vm1358_vm1, 1, %v3797_v14  ;;  %v1452_v23 = vsel %vm1451_vm7, 1, %v3797_v14  ;;  %v3723_v52 = vld [vmem:[%s4483_s10 + $0x18] sm:$0xff]  }
 0x3c1   : > { %vm4047_vm13 = vcmp.eq.s32.totalorder %v1274_v48, 1  ;;  %v1367_v11 = vrot.slane %v1359_v6, %v4025_v33  ;;  %vm1275_vm4 = vcmp.eq.s32.totalorder %v1270_v4, 1  ;;  %v1363_v22 = vrot.slane %v1359_v6, %v4028_v35 }
 0x3c2   : > { %v1215_v8 = vsel %vm1156_vm15, %v1108_v63, 0  ;;  %v1460_v28 = vrot.slane %v1452_v23, %v4025_v33  ;;  %vm1469_vm10 = vcmask 908288   ;;  %vm1544_vm12 = vcmp.gt.f32.partialorder %v3297_v31, 0.5 }
 0x3c3   : > { %1923 = vperm.xlu1 %3548, %v1915_v25   ;;  %vm1369_vm6 = vcmp.eq.s32.totalorder %v1367_v11, 1  ;;  %v1456_v40 = vrot.slane %v1452_v23, %v4028_v35  ;;  %v1545_v41 = vsel %vm1544_vm12, 1, %v3797_v14  ;;  %vm1562_vm1 = vcmask 900096  }
 0x3c7   : > { %1005 = vperm.xlu1 %3548, %v997_v26  }
 0x408   : > { %v1282_v1 = vpop.permute.xlu0 %1281 }
 0x409   : > { %v3561_v42 = vpop.permute.xlu1 %3560 }
 0x40a   : > { %v3563_v43 = vunpack.i.h.bf16 %v3561_v42  ;;  %v3562_v44 = vunpack.i.l.bf16 %v3561_v42 }
 0x40c   : > { %v1137_v46 = vsel %vm1136_vm8, %v3562_v44, %v3563_v43  ;;  %v1375_v13 = vpop.permute.xlu0 %1374 }
 0x40d   : > { %v1135_v47 = vpop.permute.xlu1 %1134  ;;  %v1141_v49 = vsel %vm1125_vm9, %v1137_v46, 0.0  ;;  %vm1368_vm9 = vcmp.eq.s32.totalorder %v1363_v22, 1  ;;  %v1553_v46 = vrot.slane %v1545_v41, %v4025_v33  ;;  %v3725_v22 = vld [vmem:[%s4483_s10 + $0x28] sm:$0xff]  }
 0x40e   : > { %v1138_v50 = vsel %vm1136_vm8, %v3563_v43, %v1135_v47  ;;  %v1143_v51 = vpack.c.bf16 %v1141_v49, %v1141_v49  ;;  %v3303_v49 = vld [vmem:[%s4519_s1 + $0x6] ss:$8 sm:$0x3] }
 0x40f   : > { %v1142_v53 = vsel %vm1126_vm11, %v1138_v50, 0.0  ;;  %vm1462_vm11 = vcmp.eq.s32.totalorder %v1460_v28, 1 }
 0x410   : > { %v1144_v56 = vpack.c.bf16 %v1142_v53, %v1142_v53  ;;  %v1158_v61 = vsel %vm1156_vm15, %v1143_v51, 0  ;;  %v1468_v30 = vpop.permute.xlu0 %1467 }
 0x411   : > { %v3566_v58 = vpop.permute.xlu1 %3565 }
 0x412   : > { %v3568_v60 = vunpack.i.h.bf16 %v3566_v58  ;;  %3274 = vmatprep.subr.msk.bf16.mxu0 %vm1156_vm15, %v1144_v56  ;;  %v3567_v2 = vunpack.i.l.bf16 %v3566_v58  ;;  %v1549_v56 = vrot.slane %v1545_v41, %v4028_v35 }
 0x413   : > { %1164 = vmatpush1.bf16.msra.mxu0 %v1158_v61 }
 0x414   : > { %v1285_v3 = vsel %vm1283_vm14, %v3568_v60, %v1282_v1  ;;  %3277 = vmatprep.subr.msk.bf16.mxu0 %vm1156_vm15, %v1109_v59  ;;  %v1284_v10 = vsel %vm1283_vm14, %v3567_v2, %v3568_v60  ;;  %v1561_v48 = vpop.permute.xlu0 %1560  ;;  %vm1554_vm7 = vcmp.eq.s32.totalorder %v1549_v56, 1  ;;  %v3309_v2 = vld [vmem:[%s4519_s1 + $0x7] ss:$8 sm:$0x3] }
 0x415   : > { %v1289_v5 = vsel %vm4047_vm13, %v1285_v3, 0.0  ;;  %v3571_v7 = vpop.permute.xlu1 %3570  ;;  %v1288_v16 = vsel %vm1275_vm4, %v1284_v10, 0.0  ;;  %vm1461_vm13 = vcmp.eq.s32.totalorder %v1456_v40, 1  ;;  %vm1555_vm4 = vcmp.eq.s32.totalorder %v1553_v46, 1 }
 0x416   : > { %3275 = vmatmul.mubr.msk.bf16.vlgmr.msra.gmra.mrb[12].mxu0 %vm4511_vm0, %v3720_v62  ;;  %v1291_v9 = vpack.c.bf16 %v1289_v5, %v1289_v5  ;;  %v3573_v12 = vunpack.i.h.bf16 %v3571_v7  ;;  %v1290_v19 = vpack.c.bf16 %v1288_v16, %v1288_v16  ;;  %v3572_v21 = vunpack.i.l.bf16 %v3571_v7  ;;  %v3724_v5 = vld [vmem:[%s4483_s10 + $0x20] sm:$0xff]  }
 0x417   : > { %1221 = vmatpush1.bf16.msra.mxu0 %v1215_v8  ;;  %1252 = vmatprep.mubr.bf16.mxu0 %v3797_v14  ;;  %vm1730_vm12 = vcmp.gt.f32.partialorder %v3309_v2, 0.5 }
 0x418   : > { %3283 = vmatprep.subr.msk.bf16.mxu0 %vm1156_vm15, %v1291_v9  ;;  %v1378_v17 = vsel %vm1376_vm5, %v3573_v12, %v1375_v13  ;;  %v1304_v25 = vsel %vm1156_vm15, %v1290_v19, 0  ;;  %v1377_v27 = vsel %vm1376_vm5, %v3572_v21, %v3573_v12  ;;  %v1654_v1 = vpop.permute.xlu0 %1653  ;;  %v1731_v10 = vsel %vm1730_vm12, 1, %v3797_v14  ;;  %v3315_v19 = vld [vmem:[%s4519_s1 + $0x10] ss:$8 sm:$0x3] }
 0x419   : > { %v1382_v20 = vsel %vm1369_vm6, %v1378_v17, 0.0  ;;  %v3576_v24 = vpop.permute.xlu1 %3575  ;;  %v1381_v32 = vsel %vm1368_vm9, %v1377_v27, 0.0  ;;  %vm1637_vm6 = vcmp.gt.f32.partialorder %v3303_v49, 0.5  ;;  %vm1655_vm9 = vcmask 785408  }
 0x41a   : > { %v1384_v26 = vpack.c.bf16 %v1382_v20, %v1382_v20  ;;  %v3578_v29 = vunpack.i.h.bf16 %v3576_v24  ;;  %v1383_v37 = vpack.c.bf16 %v1381_v32, %v1381_v32  ;;  %v3577_v39 = vunpack.i.l.bf16 %v3576_v24 }
 0x41b   : > { %v1638_v57 = vsel %vm1637_vm6, 1, %v3797_v14  ;;  %v1739_v16 = vrot.slane %v1731_v10, %v4025_v33  ;;  %vm1841_vm12 = vcmask 769024  }
 0x41c   : > { %v1471_v34 = vsel %vm1469_vm10, %v3578_v29, %v1468_v30  ;;  %v1397_v43 = vsel %vm1156_vm15, %v1383_v37, 0  ;;  %v1470_v45 = vsel %vm1469_vm10, %v3577_v39, %v3578_v29  ;;  %v1646_v62 = vrot.slane %v1638_v57, %v4025_v33  ;;  %v3726_v39 = vld [vmem:[%s4483_s10 + $0x30] sm:$0xff]  }
 0x41d   : > { %v1475_v38 = vsel %vm1462_vm11, %v1471_v34, 0.0  ;;  %v3581_v42 = vpop.permute.xlu1 %3580  ;;  %v1474_v50 = vsel %vm1461_vm13, %v1470_v45, 0.0  ;;  %v1642_v9 = vrot.slane %v1638_v57, %v4028_v35  ;;  %vm1741_vm6 = vcmp.eq.s32.totalorder %v1739_v16, 1 }
 0x41e   : > { %v1477_v44 = vpack.c.bf16 %v1475_v38, %v1475_v38  ;;  %v3583_v47 = vunpack.i.h.bf16 %v3581_v42  ;;  %v1476_v53 = vpack.c.bf16 %v1474_v50, %v1474_v50  ;;  %v3582_v55 = vunpack.i.l.bf16 %v3581_v42 }
 0x41f   : > { %vm1648_vm11 = vcmp.eq.s32.totalorder %v1646_v62, 1  ;;  %vm1647_vm13 = vcmp.eq.s32.totalorder %v1642_v9, 1 }
 0x420   : > { %v1564_v51 = vsel %vm1562_vm1, %v3583_v47, %v1561_v48  ;;  %v1490_v59 = vsel %vm1156_vm15, %v1476_v53, 0  ;;  %v1563_v61 = vsel %vm1562_vm1, %v3582_v55, %v3583_v47  ;;  %v3727_v48 = vld [vmem:[%s4483_s10 + $0x38] sm:$0xff]  }
 0x421   : > { %v1568_v54 = vsel %vm1555_vm4, %v1564_v51, 0.0  ;;  %v3586_v58 = vpop.permute.xlu1 %3585  ;;  %v1567_v3 = vsel %vm1554_vm7, %v1563_v61, 0.0  ;;  %vm1748_vm4 = vcmask 777216   ;;  %vm1823_vm7 = vcmp.gt.f32.partialorder %v3315_v19, 0.5  ;;  %v3728_v51 = vld [vmem:[%s4483_s10 + $0x40] sm:$0xff]  }
 0x422   : > { %3278 = vmatmul.mubr.msk.bf16.vlgmr.msra.gmra.mrb[12].mxu0 %vm4511_vm0, %v3721_v18  ;;  %v1570_v60 = vpack.c.bf16 %v1568_v54, %v1568_v54  ;;  %v3588_v63 = vunpack.i.h.bf16 %v3586_v58  ;;  %v1569_v6 = vpack.c.bf16 %v1567_v3, %v1567_v3  ;;  %v3587_v8 = vunpack.i.l.bf16 %v3586_v58  ;;  %v1747_v18 = vpop.permute.xlu0 %1746 }
 0x423   : > { %1310 = vmatpush1.bf16.msra.mxu0 %v1304_v25  ;;  %1341 = vmatprep.mubr.bf16.mxu0 %v3797_v14  ;;  %v1824_v27 = vsel %vm1823_vm7, 1, %v3797_v14  ;;  %vm1948_vm7 = vcmask 130048  }
 0x424   : > { %3289 = vmatprep.subr.msk.bf16.mxu0 %vm1156_vm15, %v1384_v26  ;;  %v1657_v4 = vsel %vm1655_vm9, %v3588_v63, %v1654_v1  ;;  %v1583_v12 = vsel %vm1156_vm15, %v1569_v6, 0  ;;  %v1656_v15 = vsel %vm1655_vm9, %v3587_v8, %v3588_v63  ;;  %v1735_v26 = vrot.slane %v1731_v10, %v4028_v35 }
 0x425   : > { %v1661_v7 = vsel %vm1648_vm11, %v1657_v4, 0.0  ;;  %v3591_v11 = vpop.permute.xlu1 %3590  ;;  %v1660_v20 = vsel %vm1647_vm13, %v1656_v15, 0.0  ;;  %v1832_v32 = vrot.slane %v1824_v27, %v4025_v33 }
 0x426   : > { %v1663_v13 = vpack.c.bf16 %v1661_v7, %v1661_v7  ;;  %v3593_v17 = vunpack.i.h.bf16 %v3591_v11  ;;  %v1662_v23 = vpack.c.bf16 %v1660_v20, %v1660_v20  ;;  %v3592_v25 = vunpack.i.l.bf16 %v3591_v11 }
 0x427   : > { %vm1740_vm11 = vcmp.eq.s32.totalorder %v1735_v26, 1  ;;  %vm1834_vm13 = vcmp.eq.s32.totalorder %v1832_v32, 1 }
 0x428   : > { %v1750_v21 = vsel %vm1748_vm4, %v3593_v17, %v1747_v18  ;;  %v1676_v29 = vsel %vm1156_vm15, %v1662_v23, 0  ;;  %v1749_v31 = vsel %vm1748_vm4, %v3592_v25, %v3593_v17 }
 0x429   : > { %v1754_v24 = vsel %vm1741_vm6, %v1750_v21, 0.0  ;;  %v3596_v28 = vpop.permute.xlu1 %3595  ;;  %v1753_v37 = vsel %vm1740_vm11, %v1749_v31, 0.0 }
 0x42a   : > { %v1756_v30 = vpack.c.bf16 %v1754_v24, %v1754_v24  ;;  %v3598_v34 = vunpack.i.h.bf16 %v3596_v28  ;;  %v1755_v40 = vpack.c.bf16 %v1753_v37, %v1753_v37  ;;  %v3597_v42 = vunpack.i.l.bf16 %v3596_v28  ;;  %v1943_v37 = vld [vmem:[%s4487_s14 + $0x8] sm:$0xff] }
 0x42c   : > { %v1842_v46 = vsel %vm1841_vm12, %v3597_v42, %v3598_v34 }
 0x42e   : > { %3284 = vmatmul.mubr.msk.bf16.vlgmr.msra.gmra.mrb[12].mxu0 %vm4511_vm0, %v3722_v36  ;;  %v1840_v36 = vpop.permute.xlu0 %1839 }
 0x42f   : > { %1403 = vmatpush1.bf16.msra.mxu0 %v1397_v43  ;;  %1434 = vmatprep.mubr.bf16.mxu0 %v3797_v14  ;;  %v1843_v38 = vsel %vm1841_vm12, %v3598_v34, %v1840_v36  ;;  %v1828_v43 = vrot.slane %v1824_v27, %v4028_v35  ;;  %v1942_v36 = vld [vmem:[%s4487_s14] sm:$0xff] }
 0x430   : > { %3295 = vmatprep.subr.msk.bf16.mxu0 %vm1156_vm15, %v1477_v44  ;;  %v1847_v41 = vsel %vm1834_vm13, %v1843_v38, 0.0  ;;  %v1769_v44 = vsel %vm1156_vm15, %v1755_v40, 0 }
 0x431   : > { %v1849_v45 = vpack.c.bf16 %v1847_v41, %v1847_v41  ;;  %vm1833_vm6 = vcmp.eq.s32.totalorder %v1828_v43, 1 }
 0x432   : > { %v1846_v47 = vsel %vm1833_vm6, %v1842_v46, 0.0  ;;  %v908_v62 = vpop.permute.xlu0 %907 }
 0x433   : > { %v1848_v49 = vpack.c.bf16 %v1846_v47, %v1846_v47 }
 0x435   : > { %v1862_v50 = vsel %vm1156_vm15, %v1848_v49, 0 }
 0x43a   : > { %3290 = vmatmul.mubr.msk.bf16.vlgmr.msra.gmra.mrb[12].mxu0 %vm4511_vm0, %v3723_v52 }
 0x43b   : > { %1496 = vmatpush1.bf16.msra.mxu0 %v1490_v59  ;;  %1527 = vmatprep.mubr.bf16.mxu0 %v3797_v14 }
 0x43c   : > { %3301 = vmatprep.subr.msk.bf16.mxu0 %vm1156_vm15, %v1570_v60  ;;  %v903_v60 = vpop.permute.xlu1 %902 }
 0x440   : > { %v1919_v61 = vpop.permute.xlu1 %1918 }
 0x444   : > { %v1924_v1 = vpop.permute.xlu1 %1923 }
 0x446   : > { %3296 = vmatmul.mubr.msk.bf16.vlgmr.msra.gmra.mrb[12].mxu0 %vm4511_vm0, %v3724_v5  ;;  %v1001_v5 = vpop.permute.xlu0 %1000 }
 0x447   : > { %1589 = vmatpush1.bf16.msra.mxu0 %v1583_v12  ;;  %1620 = vmatprep.mubr.bf16.mxu0 %v3797_v14 }
 0x448   : > { %3307 = vmatprep.subr.msk.bf16.mxu0 %vm1156_vm15, %v1663_v13  ;;  %v1006_v19 = vpop.permute.xlu1 %1005 }
 0x452   : > { %3302 = vmatmul.mubr.msk.bf16.vlgmr.msra.gmra.mrb[12].mxu0 %vm4511_vm0, %v3725_v22 }
 0x453   : > { %1682 = vmatpush1.bf16.msra.mxu0 %v1676_v29  ;;  %1713 = vmatprep.mubr.bf16.mxu0 %v3797_v14 }
 0x454   : > { %3313 = vmatprep.subr.msk.bf16.mxu0 %vm1156_vm15, %v1756_v30 }
 0x45e   : > { %3308 = vmatmul.mubr.msk.bf16.vlgmr.msra.gmra.mrb[12].mxu0 %vm4511_vm0, %v3726_v39 }
 0x45f   : > { %1775 = vmatpush1.bf16.msra.mxu0 %v1769_v44  ;;  %1806 = vmatprep.mubr.bf16.mxu0 %v3797_v14  ;;  %v1944_v44 = vld [vmem:[%s4485_s12] sm:$0xff] }
 0x460   : > { %3319 = vmatprep.subr.msk.bf16.mxu0 %vm1156_vm15, %v1849_v45  ;;  %v1946_v45 = vld [vmem:[%s4486_s13] sm:$0xff] }
 0x46a   : > { %3314 = vmatmul.mubr.msk.bf16.vlgmr.msra.gmra.mrb[12].mxu0 %vm4511_vm0, %v3727_v48 }
 0x46b   : > { %1868 = vmatpush1.bf16.msra.mxu0 %v1862_v50  ;;  %1899 = vmatprep.mubr.bf16.mxu0 %v3797_v14 }
 0x476   : > { %3320 = vmatmul.mubr.msk.bf16.vlgmr.msra.gmra.mrb[12].mxu0 %vm4511_vm0, %v3728_v51 }
 0x47e   : > { %v983_v52 = vpop.f32.mrb[2].mxu0 }
 0x47f   : > { %v985_v53 = vpop.f32.mrb[3].mxu0  ;;  %v984_v63 = vadd.f32 %v983_v52, %v903_v60 }
 0x480   : > { %v986_v2 = vadd.f32 %v985_v53, %v903_v60  ;;  %v3785_v60 = vld [vmem:[#allocation3] sm:$0xff] }
 0x481   : > { %v1930_v7 = vadd.f32 1.0, %v984_v63 }
 0x482   : > { %v989_v54 = vpop.f32.mrb[4].mxu0  ;;  %v1931_v10 = vadd.f32 1.0, %v986_v2 }
 0x483   : > { %v991_v55 = vpop.f32.mrb[5].mxu0  ;;  %v990_v3 = vadd.f32 %v989_v54, %v908_v62 }
 0x484   : > { %v992_v4 = vadd.f32 %v991_v55, %v908_v62 }
 0x485   : > { %v1932_v13 = vadd.f32 1.0, %v990_v3 }
 0x486   : > { %v1080_v56 = vpop.f32.mrb[6].mxu0  ;;  %v1933_v20 = vadd.f32 1.0, %v992_v4  ;;  %v1945_v4 = vld [vmem:[%s4485_s12 + $0x8] sm:$0xff] }
 0x487   : > { %v1082_v57 = vpop.f32.mrb[7].mxu0  ;;  %v1081_v15 = vadd.f32 %v1080_v56, %v1001_v5 }
 0x488   : > { %v1083_v21 = vadd.f32 %v1082_v57, %v1001_v5 }
 0x48a   : > { %v1086_v58 = vpop.f32.mrb[8].mxu0 }
 0x48b   : > { %v1088_v59 = vpop.f32.mrb[9].mxu0  ;;  %v1087_v24 = vadd.f32 %v1086_v58, %v1006_v19 }
 0x48c   : > { %v1089_v27 = vadd.f32 %v1088_v59, %v1006_v19 }
 0x549   : > { %v1901_v6 = vpop.f32.mrb[12].mxu0 }
 0x54a   : > { %v1926_v8 = vadd.f32 %v1919_v61, %v1901_v6  ;;  %v1903_v9 = vpop.f32.mrb[13].mxu0 }
 0x54b   : > { %v1927_v11 = vadd.f32 %v1919_v61, %v1903_v9  ;;  %v1905_v12 = vpop.f32.mrb[14].mxu0 }
 0x54c   : > { %v1934_v16 = vmul.f32 %v1930_v7, %v1926_v8  ;;  %v1928_v17 = vadd.f32 %v1924_v1, %v1905_v12  ;;  %v1907_v18 = vpop.f32.mrb[15].mxu0 }
 0x54d   : > { %v1935_v22 = vmul.f32 %v1931_v10, %v1927_v11  ;;  %v1929_v23 = vadd.f32 %v1924_v1, %v1907_v18 }
 0x54e   : > { %v1938_v25 = vadd.f32 %v1934_v16, %v1081_v15  ;;  %v1936_v26 = vmul.f32 %v1932_v13, %v1928_v17 }
 0x54f   : > { %v1939_v28 = vadd.f32 %v1935_v22, %v1083_v21  ;;  %v1937_v29 = vmul.f32 %v1933_v20, %v1929_v23 }
 0x550   : > { %v1940_v30 = vadd.f32 %v1936_v26, %v1087_v24 }
 0x551   : > { %v1941_v31 = vadd.f32 %v1937_v29, %v1089_v27 }
 0x552   : > { %v3451_v34 = vpack.c.bf16 %v1940_v30, %v1938_v25 }
 0x553   : > { %v3449_v32 = vpack.c.bf16 %v1941_v31, %v1939_v28 }
 0x555   : > { %3450 = vmatprep.subr.bf16.mxu1 %v3449_v32 }
 0x556   : > { %3452 = vmatpush1.bf16.msra.mxu1 %v3451_v34 }
 0x559   : > { %3321 = vmatmul.mubr.msk.f32.vlgmr.msra.gmra.mrb[2].mxu1 %vm1948_vm7, %v1942_v36 }
 0x55a   : > { %2025 = vmatprep.mubr.f32.mxu1 %v3796_v0 }
 0x55d   : > { %3322 = vmatmul.mubr.msk.f32.gmra.mrb[4].mxu1 %vm1948_vm7, %v1943_v37 }
 0x55e   : > { %2112 = vmatprep.mubr.f32.mxu1 %v3796_v0  ;;  %v1947_v0 = vld [vmem:[%s4486_s13 + $0x8] sm:$0xff] }
 0x62c   : > { %v2021_v38 = vpop.f32.mrb[2].mxu1 }
 0x62d   : > { %v2023_v39 = vpop.f32.mrb[3].mxu1 }
 0x62e   : > { %v2032_v40 = vadd.f32 %v2023_v39, %v2021_v38 }
 0x630   : > { %2033 = vadd.xlane.f32.xlu0 %v2032_v40  ;;  %v2027_v41 = vpop.f32.mrb[4].mxu1 }
 0x631   : > { %v2029_v42 = vpop.f32.mrb[5].mxu1 }
 0x632   : > { %v2035_v43 = vadd.f32 %v2029_v42, %v2027_v41 }
 0x634   : > { %2036 = vadd.xlane.f32.xlu1 %v2035_v43 }
 0x645   : > { %2143 = vperm.xlu1 %3548, %v1944_v44  }
 0x649   : > { %2157 = vperm.xlu1 %3548, %v1946_v45  }
 0x64d   : > { %2162 = vperm.xlu1 %3548, %v1947_v0  }
 0x6bd   : > { %v2034_v46 = vpop.xlane.xlu0 %2033 }
 0x6be   : > { %v2038_v47 = vmul.f32 0.001953125, %v2034_v46 }
 0x6c0   : > { %v2040_v49 = vsub.f32 %v1938_v25, %v2038_v47  ;;  %v2041_v50 = vsub.f32 %v1939_v28, %v2038_v47 }
 0x6c1   : > { %v2037_v48 = vpop.xlane.xlu1 %2036 }
 0x6c2   : > { %v2039_v51 = vmul.f32 0.001953125, %v2037_v48  ;;  %v2044_v54 = vmul.f32 %v2040_v49, %v2040_v49  ;;  %v2045_v55 = vmul.f32 %v2041_v50, %v2041_v50 }
 0x6c4   : > { %v2042_v52 = vsub.f32 %v1940_v30, %v2039_v51  ;;  %v2043_v53 = vsub.f32 %v1941_v31, %v2039_v51 }
 0x6c5   : > { %v2144_v11 = vpop.permute.xlu1 %2143 }
 0x6c6   : > { %v2046_v56 = vmul.f32 %v2042_v52, %v2042_v52  ;;  %v2047_v57 = vmul.f32 %v2043_v53, %v2043_v53 }
 0x6c8   : > { %v3455_v58 = vpack.c.bf16 %v2046_v56, %v2044_v54  ;;  %v3453_v59 = vpack.c.bf16 %v2047_v57, %v2045_v55 }
 0x6c9   : > { %v2158_v16 = vpop.permute.xlu1 %2157 }
 0x6ca   : > { %3454 = vmatprep.subr.bf16.mxu1 %v3453_v59 }
 0x6cb   : > { %3456 = vmatpush1.bf16.msra.mxu1 %v3455_v58 }
 0x6cd   : > { %v2163_v29 = vpop.permute.xlu1 %2162 }
 0x6ce   : > { %3323 = vmatmul.mubr.msk.f32.vlgmr.msra.gmra.mrb[6].mxu1 %vm1948_vm7, %v1942_v36 }
 0x6cf   : > { %2118 = vmatprep.mubr.f32.mxu1 %v3785_v60 }
 0x6d2   : > { %3324 = vmatmul.mubr.msk.f32.gmra.mrb[8].mxu1 %vm1948_vm7, %v1943_v37 }
 0x6d3   : > { %2338 = vmatprep.mubr.bf16.mxu1 %v3797_v14 }
 0x7a1   : > { %v2114_v61 = vpop.f32.mrb[6].mxu1 }
 0x7a2   : > { %v2116_v62 = vpop.f32.mrb[7].mxu1 }
 0x7a3   : > { %v2125_v63 = vadd.f32 %v2116_v62, %v2114_v61 }
 0x7a5   : > { %2126 = vadd.xlane.f32.xlu0 %v2125_v63  ;;  %v2120_v1 = vpop.f32.mrb[8].mxu1 }
 0x7a6   : > { %v2122_v2 = vpop.f32.mrb[9].mxu1 }
 0x7a7   : > { %v2128_v3 = vadd.f32 %v2122_v2, %v2120_v1 }
 0x7a9   : > { %2129 = vadd.xlane.f32.xlu0 %v2128_v3  ;;  %v3079_v3 = vld [vmem:[%s4489_s16] sm:$0xff] }
 0x7bf   : > { %2148 = vperm.xlu0 %3599, %v1945_v4   ;;  %v3160_v4 = vld [vmem:[%s4491_s18] sm:$0xff] }
 0x832   : > { %v2127_v5 = vpop.xlane.xlu0 %2126 }
 0x833   : > { %v2131_v6 = vmul.f32 0.001953125, %v2127_v5  ;;  %v3080_v5 = vld [vmem:[%s4489_s16 + $0x8] sm:$0xff] }
 0x835   : > { %v2133_v7 = vadd.f32 1e-05, %v2131_v6  ;;  %v3161_v6 = vld [vmem:[%s4491_s18 + $0x8] sm:$0xff] }
 0x836   : > { %v2130_v8 = vpop.xlane.xlu0 %2129 }
 0x837   : > { %3765 = vrsqrt.f32 %v2133_v7  ;;  %v2132_v9 = vmul.f32 0.001953125, %v2130_v8  ;;  %v3329_v7 = vld [vmem:[%s4519_s1 + $0x1] ss:$8 sm:$0x3] }
 0x838   : > { %v2227_v8 = vld [vmem:[%s4519_s1] ss:$8 sm:$0x3] }
 0x839   : > { %v2134_v10 = vadd.f32 1e-05, %v2132_v9 }
 0x83b   : > { %3767 = vrsqrt.f32 %v2134_v10  ;;  %v3348_v10 = vld [vmem:[%s4519_s1 + $0x2] ss:$8 sm:$0x3] }
 0x83c   : > { %vm2401_vm11 = vcmp.gt.f32.partialorder %v3348_v10, 0.5 }
 0x83e   : > { %v2149_v24 = vpop.permute.xlu0 %2148 }
 0x841   : > { %v3766_v12 = vpop.eup %3765 }
 0x842   : > { %v2138_v13 = vmul.f32 %v3766_v12, %v2041_v50  ;;  %v2137_v15 = vmul.f32 %v3766_v12, %v2040_v49 }
 0x844   : > { %v2152_v17 = vmul.f32 %v2144_v11, %v2138_v13  ;;  %v2151_v18 = vmul.f32 %v2144_v11, %v2137_v15 }
 0x845   : > { %v3768_v19 = vpop.eup %3767 }
 0x846   : > { %v2139_v20 = vmul.f32 %v3768_v19, %v2042_v52  ;;  %v2140_v21 = vmul.f32 %v3768_v19, %v2043_v53  ;;  %v2166_v22 = vadd.f32 %v2158_v16, %v2152_v17  ;;  %v2165_v23 = vadd.f32 %v2158_v16, %v2151_v18 }
 0x847   : > { %v2402_v19 = vsel %vm2401_vm11, 1, %v3797_v14 }
 0x848   : > { %v2153_v25 = vmul.f32 %v2149_v24, %v2139_v20  ;;  %v2154_v26 = vmul.f32 %v2149_v24, %v2140_v21  ;;  %v3326_v27 = vmul.f32 -1.442695, %v2166_v22  ;;  %v3325_v28 = vmul.f32 -1.442695, %v2165_v23 }
 0x84a   : > { %v2167_v30 = vadd.f32 %v2163_v29, %v2153_v25  ;;  %v2168_v31 = vadd.f32 %v2163_v29, %v2154_v26  ;;  %3769 = vpow2.f32 %v3326_v27 }
 0x84b   : > { %3771 = vpow2.f32 %v3325_v28 }
 0x84c   : > { %v3327_v32 = vmul.f32 -1.442695, %v2167_v30  ;;  %v3328_v34 = vmul.f32 -1.442695, %v2168_v31 }
 0x84e   : > { %3773 = vpow2.f32 %v3327_v32 }
 0x84f   : > { %3775 = vpow2.f32 %v3328_v34 }
 0x854   : > { %v3770_v36 = vpop.eup %3769 }
 0x855   : > { %v3772_v37 = vpop.eup %3771  ;;  %v2182_v38 = vadd.f32 1.0, %v3770_v36 }
 0x856   : > { %v2181_v39 = vadd.f32 1.0, %v3772_v37 }
 0x857   : > { %3777 = vrcp.f32 %v2182_v38 }
 0x858   : > { %v3774_v40 = vpop.eup %3773  ;;  %3779 = vrcp.f32 %v2181_v39 }
 0x859   : > { %v3776_v41 = vpop.eup %3775  ;;  %v2183_v42 = vadd.f32 1.0, %v3774_v40 }
 0x85a   : > { %v2184_v43 = vadd.f32 1.0, %v3776_v41 }
 0x85b   : > { %3781 = vrcp.f32 %v2183_v42 }
 0x85c   : > { %3783 = vrcp.f32 %v2184_v43 }
 0x861   : > { %v3778_v44 = vpop.eup %3777 }
 0x862   : > { %v3780_v45 = vpop.eup %3779  ;;  %v2194_v0 = vmul.f32 %v3778_v44, %v2166_v22 }
 0x863   : > { %v2193_v46 = vmul.f32 %v3780_v45, %v2165_v23  ;;  %v3381_v23 = vld [vmem:[%s4519_s1 + $0x5] ss:$8 sm:$0x3] }
 0x864   : > { %2203 = vrot.lane.b32.xlu1 %v2194_v0, %s3798_s2  ;;  %v3359_v0 = vld [vmem:[%s4519_s1 + $0x3] ss:$8 sm:$0x3] }
 0x865   : > { %v3782_v47 = vpop.eup %3781  ;;  %2201 = vrot.lane.b32.xlu0 %v2193_v46, %s3798_s2  ;;  %v3729_v46 = vld [vmem:[%s4488_s15 + $0x8] sm:$0xff]  }
 0x866   : > { %v3784_v48 = vpop.eup %3783  ;;  %v2195_v49 = vmul.f32 %v3782_v47, %v2167_v30  ;;  %v2410_v30 = vrot.slane %v2402_v19, %v4025_v33 }
 0x867   : > { %v2196_v50 = vmul.f32 %v3784_v48, %v2168_v31 }
 0x869   : > { %2207 = vrot.lane.b32.xlu1 %v2196_v50, %s3798_s2  ;;  %2205 = vrot.lane.b32.xlu0 %v2195_v49, %s3798_s2  ;;  %s4522_s2 = smov 127  }
 0x8d6   : > { %v2204_v51 = vpop.permute.xlu1 %2203 }
 0x8d7   : > { %v2202_v52 = vpop.permute.xlu0 %2201  ;;  %2219 = vst.msk [vmem:[#allocation3 + $0x10] sm:$0xff] %vm835_vm3, %v2204_v51 }
 0x8d8   : > { %2217 = vst.msk [vmem:[#allocation3] sm:$0xff] %vm840_vm2, %v2202_v52  ;;  %v4195_v53 = vsel %vm835_vm3, %v2202_v52, %v2204_v51 }
 0x8db   : > { %v2206_v54 = vpop.permute.xlu0 %2205  ;;  %v2208_v55 = vpop.permute.xlu1 %2207 }
 0x8dc   : > { %2220 = vst.msk [vmem:[#allocation3 + $0x18] sm:$0xff] %vm840_vm2, %v2206_v54  ;;  %v4199_v56 = vsel %vm835_vm3, %v2206_v54, %v2208_v55  ;;  %vm2251_vm2 = vcmp.gt.f32.partialorder %v3329_v7, 0.5 }
 0x8dd   : > { %2222 = vst.msk [vmem:[#allocation3 + $0x28] sm:$0xff] %vm835_vm3, %v2208_v55  ;;  %v3342_v57 = vpack.c.bf16 %v4199_v56, %v4195_v53  ;;  %vm2228_vm3 = vcmp.gt.f32.partialorder %v2227_v8, 0.5  ;;  %v2252_v9 = vsel %vm2251_vm2, 1, %v3797_v14  ;;  %v2406_v55 = vrot.slane %v2402_v19, %v4028_v35 }
 0x8de   : > { %v2248_v58 = vld [vmem:[#allocation3 + $0x10] sm:$0xff]  ;;  %v2229_v12 = vsel %vm2228_vm3, 1, %v3797_v14  ;;  %v2256_v13 = vrot.slane %v2252_v9, %v4028_v35  ;;  %v2260_v15 = vrot.slane %v2252_v9, %v4025_v33 }
 0x8df   : > { %v3600_v59 = vpack.i.bf16 %v2248_v58, %v4195_v53  ;;  %v4206_v60 = vld [vmem:[#allocation3] sm:$0xff]  ;;  %v2237_v16 = vrot.slane %v2229_v12, %v4025_v33  ;;  %v2233_v24 = vrot.slane %v2229_v12, %v4028_v35 }
 0x8e0   : > { %vm4265_vm13 = vcmp.eq.s32.totalorder %v2260_v15, 1  ;;  %vm4269_vm6 = vcmp.eq.s32.totalorder %v2256_v13, 1 }
 0x8e1   : > { %3601 = vrot.lane.b32.xlu0 %v3600_v59, %s4522_s2  ;;  %vm4274_vm2 = vcmp.eq.s32.totalorder %v2237_v16, 1  ;;  %vm3333_vm3 = vmpackc.low %vm4265_vm13, %vm4265_vm13  ;;  %vm4289_vm0 = vcmp.eq.s32.totalorder %v2233_v24, 1  ;;  %vm4302_vm13 = vcmp.eq.s32.totalorder %v2410_v30, 1 }
 0x8e2   : > { %vm3336_vm11 = vmpackc.low %vm4269_vm6, %vm4269_vm6 }
 0x8e3   : > { %v4208_v61 = vld [vmem:[#allocation3 + $0x18] sm:$0xff]  ;;  %vm3344_vm6 = vmpackc.low %vm4289_vm0, %vm4289_vm0  ;;  %vm4325_vm0 = vcmp.eq.s32.totalorder %v2406_v55, 1 }
 0x8e4   : > { %v2249_v62 = vld [vmem:[#allocation3 + $0x28] sm:$0xff]  ;;  %v3610_v63 = vpack.i.bf16 %v4208_v61, %v4206_v60  ;;  %v3345_v2 = vpack.c.bf16 %v4208_v61, %v4206_v60 }
 0x8e5   : > { %v3605_v1 = vpack.i.bf16 %v2249_v62, %v4199_v56  ;;  %v3370_v61 = vld [vmem:[%s4519_s1 + $0x4] ss:$8 sm:$0x3] }
 0x8e6   : > { %3611 = vrot.lane.b32.xlu0 %v3610_v63, %s4522_s2 }
 0x8e7   : > { %3606 = vrot.lane.b32.xlu1 %v3605_v1, %s4522_s2 }
 0x8ea   : > { %3621 = vrot.lane.b32.xlu0 %v3605_v1, %s4523_s22 }
 0x8eb   : > { %3616 = vrot.lane.b32.xlu1 %v3600_v59, %s4523_s22 }
 0x8ee   : > { %3631 = vrot.lane.b32.xlu0 %v3600_v59, %s4524_s27 }
 0x8ef   : > { %3626 = vrot.lane.b32.xlu1 %v3610_v63, %s4523_s22 }
 0x8f2   : > { %3641 = vrot.lane.b32.xlu0 %v3610_v63, %s4524_s27 }
 0x8f3   : > { %3636 = vrot.lane.b32.xlu1 %v3605_v1, %s4524_s27 }
 0x8f6   : > { %3651 = vrot.lane.b32.xlu0 %v3605_v1, %s4525_s28 }
 0x8f7   : > { %3646 = vrot.lane.b32.xlu1 %v3600_v59, %s4525_s28 }
 0x8fa   : > { %3661 = vrot.lane.b32.xlu0 %v3600_v59, %s4526_s20 }
 0x8fb   : > { %3656 = vrot.lane.b32.xlu1 %v3610_v63, %s4525_s28 }
 0x8fe   : > { %3671 = vrot.lane.b32.xlu0 %v3610_v63, %s4526_s20 }
 0x8ff   : > { %3666 = vrot.lane.b32.xlu1 %v3605_v1, %s4526_s20 }
 0x902   : > { %3681 = vrot.lane.b32.xlu0 %v3605_v1, %s4527_s3 }
 0x903   : > { %3676 = vrot.lane.b32.xlu1 %v3600_v59, %s4527_s3 }
 0x906   : > { %3691 = vrot.lane.b32.xlu0 %v3600_v59, %s4528_s21 }
 0x907   : > { %3686 = vrot.lane.b32.xlu1 %v3610_v63, %s4527_s3 }
 0x90a   : > { %3701 = vrot.lane.b32.xlu0 %v3610_v63, %s4528_s21 }
 0x90b   : > { %3696 = vrot.lane.b32.xlu1 %v3605_v1, %s4528_s21 }
 0x90e   : > { %3711 = vrot.lane.b32.xlu0 %v3605_v1, %s4529_s23 }
 0x90f   : > { %3706 = vrot.lane.b32.xlu1 %v3600_v59, %s4529_s23 }
 0x912   : > { %3083 = vperm.xlu0 %3599, %v3079_v3  }
 0x913   : > { %3716 = vrot.lane.b32.xlu1 %v3610_v63, %s4529_s23 }
 0x916   : > { %3164 = vperm.xlu0 %3599, %v3160_v4  }
 0x917   : > { %3088 = vperm.xlu1 %3548, %v3080_v5   ;;  %v3730_v5 = vld [vmem:[%s4488_s15] sm:$0xff]  }
 0x91b   : > { %3169 = vperm.xlu1 %3548, %v3161_v6  }
 0x953   : > { %v3602_v11 = vpop.permute.xlu0 %3601 }
 0x954   : > { %v3604_v17 = vunpack.i.h.bf16 %v3602_v11  ;;  %v3603_v18 = vunpack.i.l.bf16 %v3602_v11 }
 0x956   : > { %v2282_v31 = vsel %vm1136_vm8, %v3603_v18, %v3604_v17 }
 0x958   : > { %v3612_v20 = vpop.permute.xlu0 %3611 }
 0x959   : > { %v3607_v21 = vpop.permute.xlu1 %3606  ;;  %v3614_v25 = vunpack.i.h.bf16 %v3612_v20  ;;  %v3613_v26 = vunpack.i.l.bf16 %v3612_v20 }
 0x95a   : > { %v3609_v27 = vunpack.i.h.bf16 %v3607_v21  ;;  %v3608_v28 = vunpack.i.l.bf16 %v3607_v21 }
 0x95b   : > { %v2281_v32 = vsel %vm1136_vm8, %v3613_v26, %v3603_v18 }
 0x95c   : > { %v2283_v34 = vsel %vm1136_vm8, %v3614_v25, %v3608_v28  ;;  %v2284_v36 = vsel %vm1136_vm8, %v3608_v28, %v3609_v27  ;;  %v3622_v39 = vpop.permute.xlu0 %3621  ;;  %vm3341_vm8 = vmpackc.low %vm4274_vm2, %vm4274_vm2  ;;  %vm2498_vm2 = vcmp.gt.f32.partialorder %v3359_v0, 0.5  ;;  %v3731_v27 = vld [vmem:[%s4488_s15 + $0x10] sm:$0xff]   ;;  %v3392_v0 = vld [vmem:[%s4519_s1 + $0x6] ss:$8 sm:$0x3] }
 0x95d   : > { %v3334_v37 = vpack.c.bf16 %v2284_v36, %v2282_v31  ;;  %v3337_v38 = vpack.c.bf16 %v2283_v34, %v2281_v32  ;;  %v3617_v40 = vpop.permute.xlu1 %3616  ;;  %v3624_v42 = vunpack.i.h.bf16 %v3622_v39  ;;  %v3623_v43 = vunpack.i.l.bf16 %v3622_v39 }
 0x95e   : > { %v3619_v44 = vunpack.i.h.bf16 %v3617_v40  ;;  %v3618_v45 = vunpack.i.l.bf16 %v3617_v40  ;;  %v2499_v52 = vsel %vm2498_vm2, 1, %v3797_v14 }
 0x95f   : > { %3335 = vmatprep.subr.msk.bf16.mxu1 %vm3333_vm3, %v3334_v37  ;;  %v2428_v48 = vsel %vm1283_vm14, %v3623_v43, %v3624_v42  ;;  %vm3352_vm3 = vmpackc.low %vm4302_vm13, %vm4302_vm13  ;;  %v2507_v58 = vrot.slane %v2499_v52, %v4025_v33  ;;  %vm2595_vm13 = vcmp.gt.f32.partialorder %v3370_v61, 0.5  ;;  %v2503_v13 = vrot.slane %v2499_v52, %v4028_v35 }
 0x960   : > { %v2426_v49 = vsel %vm1283_vm14, %v3618_v45, %v3619_v44  ;;  %3338 = vmatpush1.bf16.msk.msra.mxu1 %vm3336_vm11, %v3337_v38  ;;  %v3632_v53 = vpop.permute.xlu0 %3631  ;;  %v2596_v10 = vsel %vm2595_vm13, 1, %v3797_v14 }
 0x961   : > { %v3627_v50 = vpop.permute.xlu1 %3626  ;;  %3343 = vmatprep.subr.msk.bf16.mxu1 %vm3341_vm8, %v3342_v57  ;;  %v3353_v51 = vpack.c.bf16 %v2428_v48, %v2426_v49  ;;  %v3634_v63 = vunpack.i.h.bf16 %v3632_v53  ;;  %v3633_v1 = vunpack.i.l.bf16 %v3632_v53  ;;  %vm2509_vm11 = vcmp.eq.s32.totalorder %v2507_v58, 1  ;;  %vm3355_vm8 = vmpackc.low %vm4325_vm0, %vm4325_vm0  ;;  %v3732_v49 = vld [vmem:[%s4488_s15 + $0x18] sm:$0xff]  }
 0x962   : > { %v3629_v56 = vunpack.i.h.bf16 %v3627_v50  ;;  %v3628_v57 = vunpack.i.l.bf16 %v3627_v50  ;;  %v2604_v17 = vrot.slane %v2596_v10, %v4025_v33  ;;  %vm2692_vm0 = vcmp.gt.f32.partialorder %v3381_v23, 0.5 }
 0x963   : > { %3339 = vmatmul.mubr.msk.bf16.vlgmr.msra.gmra.mrb[12].mxu1 %vm1948_vm7, %v3729_v46  ;;  %v2523_v7 = vsel %vm1376_vm5, %v3633_v1, %v3634_v63  ;;  %v2693_v32 = vsel %vm2692_vm0, 1, %v3797_v14  ;;  %v2600_v37 = vrot.slane %v2596_v10, %v4028_v35 }
 0x964   : > { %3346 = vmatpush1.bf16.msk.msra.mxu1 %vm3344_vm6, %v3345_v2  ;;  %2389 = vmatprep.mubr.bf16.mxu1 %v3797_v14  ;;  %v2427_v2 = vsel %vm1283_vm14, %v3629_v56, %v3623_v43  ;;  %v2425_v3 = vsel %vm1283_vm14, %v3628_v57, %v3618_v45  ;;  %v3642_v4 = vpop.permute.xlu0 %3641  ;;  %vm3363_vm6 = vmpackc.low %vm2509_vm11, %vm2509_vm11  ;;  %vm4347_vm14 = vcmp.eq.s32.totalorder %v2503_v13, 1  ;;  %vm2606_vm2 = vcmp.eq.s32.totalorder %v2604_v17, 1 }
 0x965   : > { %v3637_v54 = vpop.permute.xlu1 %3636  ;;  %3354 = vmatprep.subr.msk.bf16.mxu1 %vm3352_vm3, %v3353_v51  ;;  %v3356_v8 = vpack.c.bf16 %v2427_v2, %v2425_v3  ;;  %v3644_v15 = vunpack.i.h.bf16 %v3642_v4  ;;  %v3643_v16 = vunpack.i.l.bf16 %v3642_v4  ;;  %vm3366_vm3 = vmpackc.low %vm4347_vm14, %vm4347_vm14  ;;  %v2701_v40 = vrot.slane %v2693_v32, %v4025_v33  ;;  %v3403_v3 = vld [vmem:[%s4519_s1 + $0x7] ss:$8 sm:$0x3] }
 0x966   : > { %v3639_v59 = vunpack.i.h.bf16 %v3637_v54  ;;  %v3638_v62 = vunpack.i.l.bf16 %v3637_v54  ;;  %vm3374_vm11 = vmpackc.low %vm2606_vm2, %vm2606_vm2  ;;  %v2697_v57 = vrot.slane %v2693_v32, %v4028_v35  ;;  %vm2886_vm0 = vcmp.gt.f32.partialorder %v3403_v3, 0.5  ;;  %v3738_v2 = vld [vmem:[%s4490_s17] sm:$0xff]  }
 0x967   : > { %v2522_v24 = vsel %vm1376_vm5, %v3643_v16, %v3633_v1 }
 0x968   : > { %v2525_v6 = vsel %vm1376_vm5, %v3638_v62, %v3639_v59  ;;  %v3652_v11 = vpop.permute.xlu0 %3651  ;;  %v2524_v25 = vsel %vm1376_vm5, %v3644_v15, %v3638_v62  ;;  %vm4369_vm5 = vcmp.eq.s32.totalorder %v2600_v37, 1 }
 0x969   : > { %v3364_v9 = vpack.c.bf16 %v2525_v6, %v2523_v7  ;;  %v3647_v12 = vpop.permute.xlu1 %3646  ;;  %v3654_v18 = vunpack.i.h.bf16 %v3652_v11  ;;  %v3653_v19 = vunpack.i.l.bf16 %v3652_v11  ;;  %v3367_v30 = vpack.c.bf16 %v2524_v25, %v2522_v24  ;;  %vm3377_vm13 = vmpackc.low %vm4369_vm5, %vm4369_vm5  ;;  %v3733_v7 = vld [vmem:[%s4488_s15 + $0x20] sm:$0xff]   ;;  %v3414_v25 = vld [vmem:[%s4519_s1 + $0x10] ss:$8 sm:$0x3] }
 0x96a   : > { %v3649_v20 = vunpack.i.h.bf16 %v3647_v12  ;;  %v3648_v21 = vunpack.i.l.bf16 %v3647_v12  ;;  %v2887_v12 = vsel %vm2886_vm0, 1, %v3797_v14 }
 0x96b   : > { %v2622_v28 = vsel %vm1469_vm10, %v3653_v19, %v3654_v18 }
 0x96c   : > { %v2620_v29 = vsel %vm1469_vm10, %v3648_v21, %v3649_v20  ;;  %v3662_v34 = vpop.permute.xlu0 %3661 }
 0x96d   : > { %v3657_v26 = vpop.permute.xlu1 %3656  ;;  %v3375_v31 = vpack.c.bf16 %v2622_v28, %v2620_v29  ;;  %v3664_v43 = vunpack.i.h.bf16 %v3662_v34  ;;  %v3663_v44 = vunpack.i.l.bf16 %v3662_v34  ;;  %v3734_v29 = vld [vmem:[%s4488_s15 + $0x28] sm:$0xff]  }
 0x96e   : > { %v3659_v38 = vunpack.i.h.bf16 %v3657_v26  ;;  %v3658_v39 = vunpack.i.l.bf16 %v3657_v26 }
 0x96f   : > { %3347 = vmatmul.mubr.msk.bf16.vlgmr.msra.gmra.mrb[12].mxu1 %vm1948_vm7, %v3730_v5  ;;  %v2717_v51 = vsel %vm1562_vm1, %v3663_v44, %v3664_v43 }
 0x970   : > { %3357 = vmatpush1.bf16.msk.msra.mxu1 %vm3355_vm8, %v3356_v8  ;;  %2482 = vmatprep.mubr.bf16.mxu1 %v3797_v14  ;;  %v2621_v46 = vsel %vm1469_vm10, %v3659_v38, %v3653_v19  ;;  %v2619_v47 = vsel %vm1469_vm10, %v3658_v39, %v3648_v21  ;;  %v3672_v48 = vpop.permute.xlu0 %3671  ;;  %vm2703_vm8 = vcmp.eq.s32.totalorder %v2701_v40, 1  ;;  %vm4391_vm10 = vcmp.eq.s32.totalorder %v2697_v57, 1 }
 0x971   : > { %3365 = vmatprep.subr.msk.bf16.mxu1 %vm3363_vm6, %v3364_v9  ;;  %v3667_v36 = vpop.permute.xlu1 %3666  ;;  %vm2789_vm6 = vcmp.gt.f32.partialorder %v3392_v0, 0.5  ;;  %v3378_v52 = vpack.c.bf16 %v2621_v46, %v2619_v47  ;;  %vm3385_vm14 = vmpackc.low %vm2703_vm8, %vm2703_vm8  ;;  %v3674_v58 = vunpack.i.h.bf16 %v3672_v48  ;;  %v3673_v59 = vunpack.i.l.bf16 %v3672_v48  ;;  %v3735_v48 = vld [vmem:[%s4488_s15 + $0x30] sm:$0xff]  }
 0x972   : > { %v3669_v41 = vunpack.i.h.bf16 %v3667_v36  ;;  %v3668_v42 = vunpack.i.l.bf16 %v3667_v36  ;;  %v2790_v54 = vsel %vm2789_vm6, 1, %v3797_v14  ;;  %v2895_v19 = vrot.slane %v2887_v12, %v4025_v33 }
 0x973   : > { %v2798_v62 = vrot.slane %v2790_v54, %v4025_v33  ;;  %v2716_v4 = vsel %vm1562_vm1, %v3673_v59, %v3663_v44  ;;  %v2794_v16 = vrot.slane %v2790_v54, %v4028_v35  ;;  %v2891_v39 = vrot.slane %v2887_v12, %v4028_v35  ;;  %v3786_v59 = vld [vmem:[%s3929_s24 + $0x8] sm:$0xff] }
 0x974   : > { %v2719_v50 = vsel %vm1562_vm1, %v3668_v42, %v3669_v41  ;;  %v3682_v55 = vpop.permute.xlu0 %3681  ;;  %v2718_v5 = vsel %vm1562_vm1, %v3674_v58, %v3668_v42  ;;  %vm2897_vm5 = vcmp.eq.s32.totalorder %v2895_v19, 1  ;;  %v3736_v58 = vld [vmem:[%s4488_s15 + $0x38] sm:$0xff]  }
 0x975   : > { %v3386_v53 = vpack.c.bf16 %v2719_v50, %v2717_v51  ;;  %v3677_v56 = vpop.permute.xlu1 %3676  ;;  %v3684_v63 = vunpack.i.h.bf16 %v3682_v55  ;;  %v3683_v1 = vunpack.i.l.bf16 %v3682_v55  ;;  %vm2800_vm2 = vcmp.eq.s32.totalorder %v2798_v62, 1  ;;  %vm3407_vm6 = vmpackc.low %vm2897_vm5, %vm2897_vm5 }
 0x976   : > { %v3679_v60 = vunpack.i.h.bf16 %v3677_v56  ;;  %v3678_v61 = vunpack.i.l.bf16 %v3677_v56  ;;  %v3389_v10 = vpack.c.bf16 %v2718_v5, %v2716_v4  ;;  %vm4413_vm1 = vcmp.eq.s32.totalorder %v2794_v16, 1 }
 0x977   : > { %v2816_v8 = vsel %vm1655_vm9, %v3683_v1, %v3684_v63  ;;  %vm3399_vm8 = vmpackc.low %vm4413_vm1, %vm4413_vm1  ;;  %v3098_v62 = vpack.c.bf16 %v3786_v59, %v3786_v59 }
 0x978   : > { %v2814_v9 = vsel %vm1655_vm9, %v3678_v61, %v3679_v60  ;;  %v3692_v13 = vpop.permute.xlu0 %3691  ;;  %v3737_v60 = vld [vmem:[%s4488_s15 + $0x40] sm:$0xff]  }
 0x979   : > { %v3687_v6 = vpop.permute.xlu1 %3686  ;;  %v3397_v11 = vpack.c.bf16 %v2816_v8, %v2814_v9  ;;  %v3694_v22 = vunpack.i.h.bf16 %v3692_v13  ;;  %v3693_v23 = vunpack.i.l.bf16 %v3692_v13 }
 0x97a   : > { %v3689_v17 = vunpack.i.h.bf16 %v3687_v6  ;;  %v3688_v18 = vunpack.i.l.bf16 %v3687_v6 }
 0x97b   : > { %3358 = vmatmul.mubr.msk.bf16.vlgmr.msra.gmra.mrb[12].mxu1 %vm1948_vm7, %v3731_v27 }
 0x97c   : > { %3368 = vmatpush1.bf16.msk.msra.mxu1 %vm3366_vm3, %v3367_v30  ;;  %2579 = vmatprep.mubr.bf16.mxu1 %v3797_v14  ;;  %vm3388_vm3 = vmpackc.low %vm4391_vm10, %vm4391_vm10  ;;  %v2815_v26 = vsel %vm1655_vm9, %v3689_v17, %v3683_v1  ;;  %v2813_v27 = vsel %vm1655_vm9, %v3688_v18, %v3678_v61  ;;  %v3702_v28 = vpop.permute.xlu0 %3701  ;;  %vm2896_vm9 = vcmp.eq.s32.totalorder %v2891_v39, 1 }
 0x97d   : > { %3376 = vmatprep.subr.msk.bf16.mxu1 %vm3374_vm11, %v3375_v31  ;;  %vm3396_vm11 = vmpackc.low %vm2800_vm2, %vm2800_vm2  ;;  %v3697_v15 = vpop.permute.xlu1 %3696  ;;  %v2911_v31 = vsel %vm1748_vm4, %v3693_v23, %v3694_v22  ;;  %v3400_v32 = vpack.c.bf16 %v2815_v26, %v2813_v27  ;;  %v3704_v40 = vunpack.i.h.bf16 %v3702_v28  ;;  %v3703_v41 = vunpack.i.l.bf16 %v3702_v28 }
 0x97e   : > { %v3699_v20 = vunpack.i.h.bf16 %v3697_v15  ;;  %v3698_v21 = vunpack.i.l.bf16 %v3697_v15  ;;  %vm3410_vm10 = vmpackc.low %vm2896_vm9, %vm2896_vm9 }
 0x97f   : > { %v2910_v46 = vsel %vm1748_vm4, %v3703_v41, %v3693_v23 }
 0x980   : > { %v2913_v30 = vsel %vm1748_vm4, %v3698_v21, %v3699_v20  ;;  %v3712_v37 = vpop.permute.xlu0 %3711  ;;  %v2912_v47 = vsel %vm1748_vm4, %v3704_v40, %v3698_v21 }
 0x981   : > { %v3408_v34 = vpack.c.bf16 %v2913_v30, %v2911_v31  ;;  %v3707_v38 = vpop.permute.xlu1 %3706  ;;  %v3714_v43 = vunpack.i.h.bf16 %v3712_v37  ;;  %v3713_v44 = vunpack.i.l.bf16 %v3712_v37 }
 0x982   : > { %v3709_v45 = vunpack.i.h.bf16 %v3707_v38  ;;  %v3708_v0 = vunpack.i.l.bf16 %v3707_v38 }
 0x984   : > { %v3008_v50 = vsel %vm1841_vm12, %v3708_v0, %v3709_v45 }
 0x987   : > { %3369 = vmatmul.mubr.msk.bf16.vlgmr.msra.gmra.mrb[12].mxu1 %vm1948_vm7, %v3732_v49  ;;  %v3010_v49 = vsel %vm1841_vm12, %v3713_v44, %v3714_v43 }
 0x988   : > { %3379 = vmatpush1.bf16.msk.msra.mxu1 %vm3377_vm13, %v3378_v52  ;;  %2676 = vmatprep.mubr.bf16.mxu1 %v3797_v14  ;;  %vm2983_vm13 = vcmp.gt.f32.partialorder %v3414_v25, 0.5  ;;  %v3419_v51 = vpack.c.bf16 %v3010_v49, %v3008_v50  ;;  %v3717_v52 = vpop.permute.xlu1 %3716 }
 0x989   : > { %3387 = vmatprep.subr.msk.bf16.mxu1 %vm3385_vm14, %v3386_v53  ;;  %v2984_v36 = vsel %vm2983_vm13, 1, %v3797_v14  ;;  %v3719_v54 = vunpack.i.h.bf16 %v3717_v52  ;;  %v3718_v55 = vunpack.i.l.bf16 %v3717_v52 }
 0x98a   : > { %v2992_v42 = vrot.slane %v2984_v36, %v4025_v33  ;;  %v3411_v33 = vpack.c.bf16 %v2912_v47, %v2910_v46  ;;  %v2988_v53 = vrot.slane %v2984_v36, %v4028_v35  ;;  %v3787_v35 = vld [vmem:[%s3929_s24] sm:$0xff]  ;;  %s4551_s24 = sshll.u32 %s4553_s30, 5 }
 0x98b   : > { %v3009_v56 = vsel %vm1841_vm12, %v3719_v54, %v3713_v44  ;;  %v3007_v57 = vsel %vm1841_vm12, %v3718_v55, %v3708_v0  ;;  %v3097_v1 = vpack.c.bf16 %v3787_v35, %v3787_v35  ;;  %vm4550_vm12 = vcmask 64512   ;;  %s622_s22 = scalar_lea.vmem %s4492_s19, %s4551_s24 }
 0x98c   : > { %vm2994_vm14 = vcmp.eq.s32.totalorder %v2992_v42, 1  ;;  %vm2993_vm4 = vcmp.eq.s32.totalorder %v2988_v53, 1  ;;  %v3422_v63 = vpack.c.bf16 %v3009_v56, %v3007_v57 }
 0x98d   : > { %vm3418_vm2 = vmpackc.low %vm2994_vm14, %vm2994_vm14  ;;  %v3108_v61 = vsel %vm1156_vm15, %v3097_v1, 0 }
 0x991   : > { %v3084_v3 = vpop.permute.xlu0 %3083 }
 0x993   : > { %3380 = vmatmul.mubr.msk.bf16.vlgmr.msra.gmra.mrb[12].mxu1 %vm1948_vm7, %v3733_v7 }
 0x994   : > { %3390 = vmatpush1.bf16.msk.msra.mxu1 %vm3388_vm3, %v3389_v10  ;;  %2773 = vmatprep.mubr.bf16.mxu1 %v3797_v14  ;;  %vm3421_vm3 = vmpackc.low %vm2993_vm4, %vm2993_vm4 }
 0x995   : > { %3398 = vmatprep.subr.msk.bf16.mxu1 %vm3396_vm11, %v3397_v11  ;;  %v3165_v8 = vpop.permute.xlu0 %3164 }
 0x996   : > { %v3089_v4 = vpop.permute.xlu1 %3088 }
 0x99a   : > { %v3170_v13 = vpop.permute.xlu1 %3169 }
 0x99f   : > { %3391 = vmatmul.mubr.msk.bf16.vlgmr.msra.gmra.mrb[12].mxu1 %vm1948_vm7, %v3734_v29 }
 0x9a0   : > { %3401 = vmatpush1.bf16.msk.msra.mxu1 %vm3399_vm8, %v3400_v32  ;;  %2870 = vmatprep.mubr.bf16.mxu1 %v3797_v14 }
 0x9a1   : > { %3409 = vmatprep.subr.msk.bf16.mxu1 %vm3407_vm6, %v3408_v34 }
 0x9ab   : > { %3402 = vmatmul.mubr.msk.bf16.vlgmr.msra.gmra.mrb[12].mxu1 %vm1948_vm7, %v3735_v48 }
 0x9ac   : > { %3412 = vmatpush1.bf16.msk.msra.mxu1 %vm3410_vm10, %v3411_v33  ;;  %2967 = vmatprep.mubr.bf16.mxu1 %v3797_v14 }
 0x9ad   : > { %3420 = vmatprep.subr.msk.bf16.mxu1 %vm3418_vm2, %v3419_v51 }
 0x9b7   : > { %3413 = vmatmul.mubr.msk.bf16.vlgmr.msra.gmra.mrb[12].mxu1 %vm1948_vm7, %v3736_v58 }
 0x9b8   : > { %3423 = vmatpush1.bf16.msk.msra.mxu1 %vm3421_vm3, %v3422_v63  ;;  %3064 = vmatprep.mubr.bf16.mxu1 %v3797_v14 }
 0x9b9   : > { %3426 = vmatprep.subr.msk.bf16.mxu1 %vm1156_vm15, %v3098_v62 }
 0x9c3   : > { %3424 = vmatmul.mubr.msk.bf16.vlgmr.msra.gmra.mrb[12].mxu1 %vm1948_vm7, %v3737_v60 }
 0x9c4   : > { %3114 = vmatpush1.bf16.msra.mxu1 %v3108_v61  ;;  %3145 = vmatprep.mubr.bf16.mxu1 %v3797_v14 }
 0x9cf   : > { %3427 = vmatmul.mubr.msk.bf16.vlgmr.msra.gmra.mrb[12].mxu1 %vm4550_vm12, %v3738_v2 }
 0xaa2   : > { %v3147_v5 = vpop.f32.mrb[12].mxu1 }
 0xaa3   : > { %v3457_v6 = vadd.f32 %v3147_v5, %v3084_v3  ;;  %v3149_v7 = vpop.f32.mrb[13].mxu1 }
 0xaa4   : > { %v3458_v9 = vadd.f32 %v3149_v7, %v3084_v3  ;;  %v3151_v10 = vpop.f32.mrb[14].mxu1 }
 0xaa5   : > { %v3172_v14 = vadd.f32 %v3457_v6, %v3165_v8  ;;  %v3459_v11 = vadd.f32 %v3151_v10, %v3089_v4  ;;  %v3153_v12 = vpop.f32.mrb[15].mxu1 }
 0xaa6   : > { %v3173_v15 = vadd.f32 %v3458_v9, %v3165_v8  ;;  %v3460_v16 = vadd.f32 %v3153_v12, %v3089_v4 }
 0xaa7   : > { %3176 = vst [vmem:[%s622_s22] sm:$0xff] %v3172_v14  ;;  %v3174_v17 = vadd.f32 %v3459_v11, %v3170_v13 }
 0xaa8   : > { %3177 = vst [vmem:[%s622_s22 + $0x8] sm:$0xff] %v3173_v15  ;;  %v3175_v18 = vadd.f32 %v3460_v16, %v3170_v13 }
 0xaa9   : > { %3178 = vst [vmem:[%s622_s22 + $0x10] sm:$0xff] %v3174_v17 }
 0xaaa   : > { %3179 = vst [vmem:[%s622_s22 + $0x18] sm:$0xff] %v3175_v18 }
 0xaab PF: > { %s29_s0 = sadd.s32 1, %s3794_s0  }
 0xaac   : > { %p26_p4 = scmp.ge.s32.totalorder %s29_s0, 4  }
 0xaae   :  { %28 = sbr.rel (!%p26_p4) target bundleno = 5 (0x5), region = 153 }

</bundles_post_ra>
